<compile_context>
chip_gen: v6e
topology: v6e:2x2x1
jax: 0.10.0
libtpu: 0.0.40
codegen_flags: <defaults>
</compile_context>

<pallas_src>
import numpy as np

import jax
import jax.numpy as jnp
from jax.experimental import pallas as pl
from jax.experimental.pallas import tpu as pltpu  # noqa: F401  (kept for parity)


# --------------------------------------------------------------------------
# Fused Pallas kernel: both SubModel passes + final fc, batched over 2B samples
# --------------------------------------------------------------------------

def _net_kernel(xcat_ref, a1s_ref, b1r_ref, sek_ref, sok_ref, te1_ref, to1_ref,
                a2_ref, b2r_ref, s2e_ref, s2o_ref, te2_ref, to2_ref,
                wb_ref, bfc1r_ref, wfca_ref, wfcb_ref, bfcr_ref,
                f1_ref, f2_ref, out_ref):
    f32 = jnp.float32
    B = f1_ref.shape[0]
    n2b = 2 * B                       # total samples (x1 block then x2 block)

    # ---- conv1: kh folded into banded A1s, kw folded into x_cat columns (host) --
    # xcat: (2B*24, 42)  rows = n*24 + ow, cols = kw*14 + ih
    c1 = jnp.dot(xcat_ref[...], a1s_ref[...],
                 preferred_element_type=f32) + b1r_ref[...]        # (2B*24, 120)

    # ---- maxpool1 over W, fused with conv2's kw row-gather ----------------------
    # output rows = kw2*(2B*10) + n*10 + ow2   (the 3 kw2 shifts stacked vertically)
    mw = jnp.maximum(jnp.dot(sek_ref[...], c1, preferred_element_type=f32),
                     jnp.dot(sok_ref[...], c1, preferred_element_type=f32))  # (3*2B*10, 120)

    # ---- maxpool1 over H + ReLU -------------------------------------------------
    act1 = jnp.maximum(
        jnp.maximum(jnp.dot(mw, te1_ref[...], preferred_element_type=f32),
                    jnp.dot(mw, to1_ref[...], preferred_element_type=f32)),
        0.0)                                                        # (3*2B*10, 60)

    # ---- conv2 (3x3, 10->20); Dropout2d == identity (eval) ----------------------
    rows2 = n2b * 10
    c2 = b2r_ref[...]                                               # (1, 80), broadcasts
    for kw in range(3):                                             # aligned row-blocks
        c2 = c2 + jnp.dot(act1[kw * rows2:(kw + 1) * rows2, :], a2_ref[kw],
                          preferred_element_type=f32)               # (2B*10, 80)

    # ---- maxpool2 over W then H + ReLU ------------------------------------------
    # W-pool output rows = w2p*2B + n  (w2p-major, ready for the fc1 accumulation)
    m2 = jnp.maximum(jnp.dot(s2e_ref[...], c2, preferred_element_type=f32),
                     jnp.dot(s2o_ref[...], c2, preferred_element_type=f32))  # (2B*5, 80)
    act2 = jnp.maximum(
        jnp.maximum(jnp.dot(m2, te2_ref[...], preferred_element_type=f32),
                    jnp.dot(m2, to2_ref[...], preferred_element_type=f32)),
        0.0)                                                        # (2B*5, 40)

    # ---- flatten (folded into pre-permuted fc1 weight blocks) + fc1 + ReLU ------
    fpre = bfc1r_ref[...]                                           # (1, 50), broadcasts
    for w in range(5):                                              # (2B,40)@(40,50) dots
        fpre = fpre + jnp.dot(act2[w * n2b:(w + 1) * n2b, :], wb_ref[w],
                              preferred_element_type=f32)
    f = jnp.maximum(fpre, 0.0)                                      # (2B, 50)

    f1 = f[:B, :]
    f2 = f[B:, :]
    f1_ref[...] = f1
    f2_ref[...] = f2

    # ---- final fc on concat(f1, f2): weight split into the two 50-wide halves ---
    out_ref[...] = (bfcr_ref[...]
                    + jnp.dot(f1, wfca_ref[...], preferred_element_type=f32)
                    + jnp.dot(f2, wfcb_ref[...], preferred_element_type=f32))


def _full_spec(shape):
    return pl.BlockSpec(shape, lambda: (0,) * len(shape))


def net_forward(x1, x2, consts):
    """Net.forward: x1, x2 are NCHW (B, 1, 14, 26) -> (f1, f2, logits)."""
    B = x1.shape[0]

    # Wrapper-side layout plumbing (pure XLA, cheap): stack samples, put W on rows
    # and gather the 3 kw taps into columns -> x_cat: (2B*24, 3*14).
    x = jnp.concatenate([x1, x2], axis=0).reshape(2 * B, 14, 26).astype(jnp.float32)
    xT = jnp.transpose(x, (0, 2, 1))                               # (2B, W=26, H=14)
    xcat = jnp.concatenate([xT[:, kw:kw + 24, :] for kw in range(3)], axis=2)
    xcat = xcat.reshape(2 * B * 24, 42)                            # rows n*24+ow, cols kw*14+ih

    operands = (xcat,
                consts["a1s"], consts["b1r"],
                consts["sek"], consts["sok"], consts["te1"], consts["to1"],
                consts["a2"], consts["b2r"],
                consts["s2e"], consts["s2o"], consts["te2"], consts["to2"],
                consts["wb"], consts["bfc1r"],
                consts["wfca"], consts["wfcb"], consts["bfcr"])

    out_shape = (jax.ShapeDtypeStruct((B, 50), jnp.float32),
                 jax.ShapeDtypeStruct((B, 50), jnp.float32),
                 jax.ShapeDtypeStruct((B, 10), jnp.float32))

    return pl.pallas_call(
        _net_kernel,
        out_shape=out_shape,
        in_specs=[_full_spec(op.shape) for op in operands],
        out_specs=tuple(_full_spec(s.shape) for s in out_shape),
    )(*operands)


# --------------------------------------------------------------------------
# Host-side, one-time constant preparation (banded conv matrices, fused
# pool/shift selectors, pre-permuted fc1 weight blocks).  Depends on B only
# through the tiny 0/1 selector matrices.
# --------------------------------------------------------------------------

def build_kernel_consts(raw, B):
    w1 = np.asarray(raw["w1"], np.float32)      # (10, 1, 3, 3)
    b1 = np.asarray(raw["b1"], np.float32)      # (10,)
    w2 = np.asarray(raw["w2"], np.float32)      # (20, 10, 3, 3)
    b2 = np.asarray(raw["b2"], np.float32)      # (20,)
    wfc1 = np.asarray(raw["wfc1"], np.float32)  # (50, 200)
    bfc1 = np.asarray(raw["bfc1"], np.float32)  # (50,)
    wfc = np.asarray(raw["wfc"], np.float32)    # (10, 100)
    bfc = np.asarray(raw["bfc"], np.float32)    # (10,)

    n2b = 2 * B
    C1, H1, W1o = 10, 12, 24          # conv1 output
    H1P = 6                           # H after pool1
    C2, H2, W2o = 20, 4, 10           # conv2 output
    H2P, W2P = 2, 5                   # after pool2

    # conv1 banded weight: A1s[kw*14 + ih, oh*10 + co] = w1[co,0,ih-oh,kw]
    a1s = np.zeros((3 * 14, H1 * C1), np.float32)
    for kw in range(3):
        for oh in range(H1):
            for co in range(C1):
                for kh in range(3):
                    a1s[kw * 14 + oh + kh, oh * C1 + co] = w1[co, 0, kh, kw]
    b1r = np.tile(b1, H1).reshape(1, H1 * C1)

    # maxpool1-over-W fused with conv2 kw row-gather:
    #   output row r = kw2*(2B*10) + n*10 + ow2  selects c1 row n*24 + 2*(ow2+kw2)+p
    sek = np.zeros((3 * n2b * W2o, n2b * W1o), np.float32)
    sok = np.zeros_like(sek)
    for kw2 in range(3):
        for n in range(n2b):
            for ow in range(W2o):
                r = kw2 * n2b * W2o + n * W2o + ow
                sek[r, n * W1o + 2 * (ow + kw2)] = 1.0
                sok[r, n * W1o + 2 * (ow + kw2) + 1] = 1.0

    # maxpool1-over-H column selectors (shared across samples / kw blocks)
    te1 = np.zeros((H1 * C1, H1P * C1), np.float32)
    to1 = np.zeros_like(te1)
    for oh2 in range(H1P):
        for co in range(C1):
            te1[(2 * oh2) * C1 + co, oh2 * C1 + co] = 1.0
            to1[(2 * oh2 + 1) * C1 + co, oh2 * C1 + co] = 1.0

    # conv2 banded weights, one block per kw (kh and input channels folded in)
    a2 = np.zeros((3, H1P * C1, H2 * C2), np.float32)
    for kw in range(3):
        for oh in range(H2):
            for d in range(C2):
                for kh in range(3):
                    for c in range(C1):
                        a2[kw, (oh + kh) * C1 + c, oh * C2 + d] = w2[d, c, kh, kw]
    b2r = np.tile(b2, H2).reshape(1, H2 * C2)

    # maxpool2-over-W: output row = w2p*2B + n  (w2p-major for the fc1 step)
    s2e = np.zeros((n2b * W2P, n2b * W2o), np.float32)
    s2o = np.zeros_like(s2e)
    for w2p in range(W2P):
        for n in range(n2b):
            r = w2p * n2b + n
            s2e[r, n * W2o + 2 * w2p] = 1.0
            s2o[r, n * W2o + 2 * w2p + 1] = 1.0

    # maxpool2-over-H column selectors
    te2 = np.zeros((H2 * C2, H2P * C2), np.float32)
    to2 = np.zeros_like(te2)
    for oh2 in range(H2P):
        for d in range(C2):
            te2[(2 * oh2) * C2 + d, oh2 * C2 + d] = 1.0
            to2[(2 * oh2 + 1) * C2 + d, oh2 * C2 + d] = 1.0

    # fc1 weight, pre-permuted into per-w2p blocks consuming the kernel's
    # (oh2*20 + d) column layout; PyTorch NCHW flatten index is d*10 + oh2*5 + w2p.
    wb = np.zeros((W2P, H2P * C2, 50), np.float32)
    for w2p in range(W2P):
        for oh2 in range(H2P):
            for d in range(C2):
                wb[w2p, oh2 * C2 + d, :] = wfc1[:, d * (H2P * W2P) + oh2 * W2P + w2p]
    bfc1r = bfc1.reshape(1, 50)

    wfca = wfc[:, :50].T.copy()                  # (50, 10): f1 half of fc weight
    wfcb = wfc[:, 50:].T.copy()                  # (50, 10): f2 half
    bfcr = bfc.reshape(1, 10)

    consts = dict(a1s=a1s, b1r=b1r, sek=sek, sok=sok, te1=te1, to1=to1,
                  a2=a2, b2r=b2r, s2e=s2e, s2o=s2o, te2=te2, to2=to2,
                  wb=wb, bfc1r=bfc1r, wfca=wfca, wfcb=wfcb, bfcr=bfcr)
    return {k: jnp.asarray(v) for k, v in consts.items()}


# --------------------------------------------------------------------------
# Deterministic parameter init (PyTorch-style uniform(-1/sqrt(fan_in), ...))
# --------------------------------------------------------------------------

def init_params(key):
    ks = jax.random.split(key, 8)

    def uni(k, shape, fan_in):
        bound = 1.0 / jnp.sqrt(jnp.float32(fan_in))
        return jax.random.uniform(k, shape, jnp.float32, -bound, bound)

    return {
        "w1": uni(ks[0], (10, 1, 3, 3), 9),
        "b1": uni(ks[1], (10,), 9),
        "w2": uni(ks[2], (20, 10, 3, 3), 90),
        "b2": uni(ks[3], (20,), 90),
        "wfc1": uni(ks[4], (50, 200), 200),
        "bfc1": uni(ks[5], (50,), 200),
        "wfc": uni(ks[6], (10, 100), 100),
        "bfc": uni(ks[7], (10,), 100),
    }


# --------------------------------------------------------------------------
# Pure-XLA reference (direct NCHW convs) for a correctness sanity check
# --------------------------------------------------------------------------

def _ref_pool2x2(x):  # NCHW
    b, c, h, w = x.shape
    return x.reshape(b, c, h // 2, 2, w // 2, 2).max(axis=(3, 5))


def _ref_submodel(x, p):
    dn = ("NCHW", "OIHW", "NCHW")
    hi = jax.lax.Precision.HIGHEST
    y = jax.lax.conv_general_dilated(x, p["w1"], (1, 1), "VALID",
                                     dimension_numbers=dn, precision=hi)
    y = y + p["b1"].reshape(1, -1, 1, 1)
    y = jnp.maximum(_ref_pool2x2(y), 0.0)
    y = jax.lax.conv_general_dilated(y, p["w2"], (1, 1), "VALID",
                                     dimension_numbers=dn, precision=hi)
    y = y + p["b2"].reshape(1, -1, 1, 1)
    y = jnp.maximum(_ref_pool2x2(y), 0.0)
    flat = y.reshape(y.shape[0], -1)                         # NCHW flatten = view(-1, 200)
    return jnp.maximum(jnp.dot(flat, p["wfc1"].T, precision=hi) + p["bfc1"], 0.0)


def ref_net(x1, x2, p):
    hi = jax.lax.Precision.HIGHEST
    f1 = _ref_submodel(x1, p)
    f2 = _ref_submodel(x2, p)
    out = jnp.dot(jnp.concatenate([f1, f2], axis=1), p["wfc"].T, precision=hi) + p["bfc"]
    return f1, f2, out


# --------------------------------------------------------------------------

if __name__ == "__main__":
    key = jax.random.PRNGKey(0)
    kp, kx1, kx2 = jax.random.split(key, 3)
    raw = init_params(kp)

    B = 2
    consts = build_kernel_consts(raw, B)

    x1 = jax.random.normal(kx1, (B, 1, 14, 26), jnp.float32)
    x2 = jax.random.normal(kx2, (B, 1, 14, 26), jnp.float32)

    fwd = jax.jit(net_forward)
    f1, f2, out = fwd(x1, x2, consts)
    jax.block_until_ready((f1, f2, out))

    r1, r2, rout = ref_net(x1, x2, raw)
    assert f1.shape == (B, 50) and f2.shape == (B, 50) and out.shape == (B, 10)
    # tolerance accommodates MXU f32-multi-pass differences vs XLA's HIGHEST conv/dot
    assert jnp.allclose(f1, r1, atol=1e-2, rtol=1e-2)
    assert jnp.allclose(f2, r2, atol=1e-2, rtol=1e-2)
    assert jnp.allclose(out, rout, atol=1e-2, rtol=1e-2)

    print("KERNEL_OK")
</pallas_src>

<mosaic_0001>
module attributes {stable_mosaic.version = 11 : i64} {
  func.func @_net_kernel(%arg0: memref<96x42xf32, #tpu.memory_space<vmem>>, %arg1: memref<42x120xf32, #tpu.memory_space<vmem>>, %arg2: memref<1x120xf32, #tpu.memory_space<vmem>>, %arg3: memref<120x96xf32, #tpu.memory_space<vmem>>, %arg4: memref<120x96xf32, #tpu.memory_space<vmem>>, %arg5: memref<120x60xf32, #tpu.memory_space<vmem>>, %arg6: memref<120x60xf32, #tpu.memory_space<vmem>>, %arg7: memref<3x60x80xf32, #tpu.memory_space<vmem>>, %arg8: memref<1x80xf32, #tpu.memory_space<vmem>>, %arg9: memref<20x40xf32, #tpu.memory_space<vmem>>, %arg10: memref<20x40xf32, #tpu.memory_space<vmem>>, %arg11: memref<80x40xf32, #tpu.memory_space<vmem>>, %arg12: memref<80x40xf32, #tpu.memory_space<vmem>>, %arg13: memref<5x40x50xf32, #tpu.memory_space<vmem>>, %arg14: memref<1x50xf32, #tpu.memory_space<vmem>>, %arg15: memref<50x10xf32, #tpu.memory_space<vmem>>, %arg16: memref<50x10xf32, #tpu.memory_space<vmem>>, %arg17: memref<1x10xf32, #tpu.memory_space<vmem>>, %arg18: memref<2x50xf32, #tpu.memory_space<vmem>>, %arg19: memref<2x50xf32, #tpu.memory_space<vmem>>, %arg20: memref<2x10xf32, #tpu.memory_space<vmem>>) attributes {dimension_semantics = [], scalar_prefetch = 0 : i64, scratch_operands = 0 : i64, tpu.core_type = #tpu.core_type<tc>} {
    %c0 = arith.constant 0 : index
    %c0_0 = arith.constant 0 : index
    %0 = vector.load %arg0[%c0, %c0_0] : memref<96x42xf32, #tpu.memory_space<vmem>>, vector<96x42xf32>
    %c0_1 = arith.constant 0 : index
    %c0_2 = arith.constant 0 : index
    %1 = vector.load %arg1[%c0_1, %c0_2] : memref<42x120xf32, #tpu.memory_space<vmem>>, vector<42x120xf32>
    %cst = arith.constant dense<0.000000e+00> : vector<96x120xf32>
    %2 = tpu.matmul %0, %1, %cst {dimension_numbers = #tpu.dot_dimension_numbers<[1], [0], [0], [1], [0, 0, 1, 1], [], []>} : vector<96x42xf32>, vector<42x120xf32>, vector<96x120xf32> -> vector<96x120xf32>
    %c0_3 = arith.constant 0 : index
    %c0_4 = arith.constant 0 : index
    %3 = vector.load %arg2[%c0_3, %c0_4] : memref<1x120xf32, #tpu.memory_space<vmem>>, vector<1x120xf32>
    %4 = vector.broadcast %3 : vector<1x120xf32> to vector<96x120xf32>
    %5 = arith.addf %2, %4 : vector<96x120xf32>
    %c0_5 = arith.constant 0 : index
    %c0_6 = arith.constant 0 : index
    %6 = vector.load %arg3[%c0_5, %c0_6] : memref<120x96xf32, #tpu.memory_space<vmem>>, vector<120x96xf32>
    %cst_7 = arith.constant dense<0.000000e+00> : vector<120x120xf32>
    %7 = tpu.matmul %6, %5, %cst_7 {dimension_numbers = #tpu.dot_dimension_numbers<[1], [0], [0], [1], [0, 0, 1, 1], [], []>} : vector<120x96xf32>, vector<96x120xf32>, vector<120x120xf32> -> vector<120x120xf32>
    %c0_8 = arith.constant 0 : index
    %c0_9 = arith.constant 0 : index
    %8 = vector.load %arg4[%c0_8, %c0_9] : memref<120x96xf32, #tpu.memory_space<vmem>>, vector<120x96xf32>
    %cst_10 = arith.constant dense<0.000000e+00> : vector<120x120xf32>
    %9 = tpu.matmul %8, %5, %cst_10 {dimension_numbers = #tpu.dot_dimension_numbers<[1], [0], [0], [1], [0, 0, 1, 1], [], []>} : vector<120x96xf32>, vector<96x120xf32>, vector<120x120xf32> -> vector<120x120xf32>
    %10 = arith.maximumf %7, %9 : vector<120x120xf32>
    %c0_11 = arith.constant 0 : index
    %c0_12 = arith.constant 0 : index
    %11 = vector.load %arg5[%c0_11, %c0_12] : memref<120x60xf32, #tpu.memory_space<vmem>>, vector<120x60xf32>
    %cst_13 = arith.constant dense<0.000000e+00> : vector<120x60xf32>
    %12 = tpu.matmul %10, %11, %cst_13 {dimension_numbers = #tpu.dot_dimension_numbers<[1], [0], [0], [1], [0, 0, 1, 1], [], []>} : vector<120x120xf32>, vector<120x60xf32>, vector<120x60xf32> -> vector<120x60xf32>
    %c0_14 = arith.constant 0 : index
    %c0_15 = arith.constant 0 : index
    %13 = vector.load %arg6[%c0_14, %c0_15] : memref<120x60xf32, #tpu.memory_space<vmem>>, vector<120x60xf32>
    %cst_16 = arith.constant dense<0.000000e+00> : vector<120x60xf32>
    %14 = tpu.matmul %10, %13, %cst_16 {dimension_numbers = #tpu.dot_dimension_numbers<[1], [0], [0], [1], [0, 0, 1, 1], [], []>} : vector<120x120xf32>, vector<120x60xf32>, vector<120x60xf32> -> vector<120x60xf32>
    %15 = arith.maximumf %12, %14 : vector<120x60xf32>
    %cst_17 = arith.constant 0.000000e+00 : f32
    %16 = vector.broadcast %cst_17 : f32 to vector<120x60xf32>
    %17 = arith.maximumf %15, %16 : vector<120x60xf32>
    %c0_18 = arith.constant 0 : index
    %c0_19 = arith.constant 0 : index
    %18 = vector.load %arg8[%c0_18, %c0_19] : memref<1x80xf32, #tpu.memory_space<vmem>>, vector<1x80xf32>
    %19 = vector.extract_strided_slice %17 {offsets = [0, 0], sizes = [40, 60], strides = [1, 1]} : vector<120x60xf32> to vector<40x60xf32>
    %c0_20 = arith.constant 0 : index
    %c0_21 = arith.constant 0 : index
    %c0_22 = arith.constant 0 : index
    %20 = vector.load %arg7[%c0_20, %c0_21, %c0_22] : memref<3x60x80xf32, #tpu.memory_space<vmem>>, vector<1x60x80xf32>
    %21 = vector.shape_cast %20 : vector<1x60x80xf32> to vector<60x80xf32>
    %cst_23 = arith.constant dense<0.000000e+00> : vector<40x80xf32>
    %22 = tpu.matmul %19, %21, %cst_23 {dimension_numbers = #tpu.dot_dimension_numbers<[1], [0], [0], [1], [0, 0, 1, 1], [], []>} : vector<40x60xf32>, vector<60x80xf32>, vector<40x80xf32> -> vector<40x80xf32>
    %23 = vector.broadcast %18 : vector<1x80xf32> to vector<40x80xf32>
    %24 = arith.addf %23, %22 : vector<40x80xf32>
    %25 = vector.extract_strided_slice %17 {offsets = [40, 0], sizes = [40, 60], strides = [1, 1]} : vector<120x60xf32> to vector<40x60xf32>
    %c1 = arith.constant 1 : index
    %c0_24 = arith.constant 0 : index
    %c0_25 = arith.constant 0 : index
    %26 = vector.load %arg7[%c1, %c0_24, %c0_25] : memref<3x60x80xf32, #tpu.memory_space<vmem>>, vector<1x60x80xf32>
    %27 = vector.shape_cast %26 : vector<1x60x80xf32> to vector<60x80xf32>
    %cst_26 = arith.constant dense<0.000000e+00> : vector<40x80xf32>
    %28 = tpu.matmul %25, %27, %cst_26 {dimension_numbers = #tpu.dot_dimension_numbers<[1], [0], [0], [1], [0, 0, 1, 1], [], []>} : vector<40x60xf32>, vector<60x80xf32>, vector<40x80xf32> -> vector<40x80xf32>
    %29 = arith.addf %24, %28 : vector<40x80xf32>
    %30 = vector.extract_strided_slice %17 {offsets = [80, 0], sizes = [40, 60], strides = [1, 1]} : vector<120x60xf32> to vector<40x60xf32>
    %c2 = arith.constant 2 : index
    %c0_27 = arith.constant 0 : index
    %c0_28 = arith.constant 0 : index
    %31 = vector.load %arg7[%c2, %c0_27, %c0_28] : memref<3x60x80xf32, #tpu.memory_space<vmem>>, vector<1x60x80xf32>
    %32 = vector.shape_cast %31 : vector<1x60x80xf32> to vector<60x80xf32>
    %cst_29 = arith.constant dense<0.000000e+00> : vector<40x80xf32>
    %33 = tpu.matmul %30, %32, %cst_29 {dimension_numbers = #tpu.dot_dimension_numbers<[1], [0], [0], [1], [0, 0, 1, 1], [], []>} : vector<40x60xf32>, vector<60x80xf32>, vector<40x80xf32> -> vector<40x80xf32>
    %34 = arith.addf %29, %33 : vector<40x80xf32>
    %c0_30 = arith.constant 0 : index
    %c0_31 = arith.constant 0 : index
    %35 = vector.load %arg9[%c0_30, %c0_31] : memref<20x40xf32, #tpu.memory_space<vmem>>, vector<20x40xf32>
    %cst_32 = arith.constant dense<0.000000e+00> : vector<20x80xf32>
    %36 = tpu.matmul %35, %34, %cst_32 {dimension_numbers = #tpu.dot_dimension_numbers<[1], [0], [0], [1], [0, 0, 1, 1], [], []>} : vector<20x40xf32>, vector<40x80xf32>, vector<20x80xf32> -> vector<20x80xf32>
    %c0_33 = arith.constant 0 : index
    %c0_34 = arith.constant 0 : index
    %37 = vector.load %arg10[%c0_33, %c0_34] : memref<20x40xf32, #tpu.memory_space<vmem>>, vector<20x40xf32>
    %cst_35 = arith.constant dense<0.000000e+00> : vector<20x80xf32>
    %38 = tpu.matmul %37, %34, %cst_35 {dimension_numbers = #tpu.dot_dimension_numbers<[1], [0], [0], [1], [0, 0, 1, 1], [], []>} : vector<20x40xf32>, vector<40x80xf32>, vector<20x80xf32> -> vector<20x80xf32>
    %39 = arith.maximumf %36, %38 : vector<20x80xf32>
    %c0_36 = arith.constant 0 : index
    %c0_37 = arith.constant 0 : index
    %40 = vector.load %arg11[%c0_36, %c0_37] : memref<80x40xf32, #tpu.memory_space<vmem>>, vector<80x40xf32>
    %cst_38 = arith.constant dense<0.000000e+00> : vector<20x40xf32>
    %41 = tpu.matmul %39, %40, %cst_38 {dimension_numbers = #tpu.dot_dimension_numbers<[1], [0], [0], [1], [0, 0, 1, 1], [], []>} : vector<20x80xf32>, vector<80x40xf32>, vector<20x40xf32> -> vector<20x40xf32>
    %c0_39 = arith.constant 0 : index
    %c0_40 = arith.constant 0 : index
    %42 = vector.load %arg12[%c0_39, %c0_40] : memref<80x40xf32, #tpu.memory_space<vmem>>, vector<80x40xf32>
    %cst_41 = arith.constant dense<0.000000e+00> : vector<20x40xf32>
    %43 = tpu.matmul %39, %42, %cst_41 {dimension_numbers = #tpu.dot_dimension_numbers<[1], [0], [0], [1], [0, 0, 1, 1], [], []>} : vector<20x80xf32>, vector<80x40xf32>, vector<20x40xf32> -> vector<20x40xf32>
    %44 = arith.maximumf %41, %43 : vector<20x40xf32>
    %cst_42 = arith.constant 0.000000e+00 : f32
    %45 = vector.broadcast %cst_42 : f32 to vector<20x40xf32>
    %46 = arith.maximumf %44, %45 : vector<20x40xf32>
    %c0_43 = arith.constant 0 : index
    %c0_44 = arith.constant 0 : index
    %47 = vector.load %arg14[%c0_43, %c0_44] : memref<1x50xf32, #tpu.memory_space<vmem>>, vector<1x50xf32>
    %48 = vector.extract_strided_slice %46 {offsets = [0, 0], sizes = [4, 40], strides = [1, 1]} : vector<20x40xf32> to vector<4x40xf32>
    %c0_45 = arith.constant 0 : index
    %c0_46 = arith.constant 0 : index
    %c0_47 = arith.constant 0 : index
    %49 = vector.load %arg13[%c0_45, %c0_46, %c0_47] : memref<5x40x50xf32, #tpu.memory_space<vmem>>, vector<1x40x50xf32>
    %50 = vector.shape_cast %49 : vector<1x40x50xf32> to vector<40x50xf32>
    %cst_48 = arith.constant dense<0.000000e+00> : vector<4x50xf32>
    %51 = tpu.matmul %48, %50, %cst_48 {dimension_numbers = #tpu.dot_dimension_numbers<[1], [0], [0], [1], [0, 0, 1, 1], [], []>} : vector<4x40xf32>, vector<40x50xf32>, vector<4x50xf32> -> vector<4x50xf32>
    %52 = vector.broadcast %47 : vector<1x50xf32> to vector<4x50xf32>
    %53 = arith.addf %52, %51 : vector<4x50xf32>
    %54 = vector.extract_strided_slice %46 {offsets = [4, 0], sizes = [4, 40], strides = [1, 1]} : vector<20x40xf32> to vector<4x40xf32>
    %c1_49 = arith.constant 1 : index
    %c0_50 = arith.constant 0 : index
    %c0_51 = arith.constant 0 : index
    %55 = vector.load %arg13[%c1_49, %c0_50, %c0_51] : memref<5x40x50xf32, #tpu.memory_space<vmem>>, vector<1x40x50xf32>
    %56 = vector.shape_cast %55 : vector<1x40x50xf32> to vector<40x50xf32>
    %cst_52 = arith.constant dense<0.000000e+00> : vector<4x50xf32>
    %57 = tpu.matmul %54, %56, %cst_52 {dimension_numbers = #tpu.dot_dimension_numbers<[1], [0], [0], [1], [0, 0, 1, 1], [], []>} : vector<4x40xf32>, vector<40x50xf32>, vector<4x50xf32> -> vector<4x50xf32>
    %58 = arith.addf %53, %57 : vector<4x50xf32>
    %59 = vector.extract_strided_slice %46 {offsets = [8, 0], sizes = [4, 40], strides = [1, 1]} : vector<20x40xf32> to vector<4x40xf32>
    %c2_53 = arith.constant 2 : index
    %c0_54 = arith.constant 0 : index
    %c0_55 = arith.constant 0 : index
    %60 = vector.load %arg13[%c2_53, %c0_54, %c0_55] : memref<5x40x50xf32, #tpu.memory_space<vmem>>, vector<1x40x50xf32>
    %61 = vector.shape_cast %60 : vector<1x40x50xf32> to vector<40x50xf32>
    %cst_56 = arith.constant dense<0.000000e+00> : vector<4x50xf32>
    %62 = tpu.matmul %59, %61, %cst_56 {dimension_numbers = #tpu.dot_dimension_numbers<[1], [0], [0], [1], [0, 0, 1, 1], [], []>} : vector<4x40xf32>, vector<40x50xf32>, vector<4x50xf32> -> vector<4x50xf32>
    %63 = arith.addf %58, %62 : vector<4x50xf32>
    %64 = vector.extract_strided_slice %46 {offsets = [12, 0], sizes = [4, 40], strides = [1, 1]} : vector<20x40xf32> to vector<4x40xf32>
    %c3 = arith.constant 3 : index
    %c0_57 = arith.constant 0 : index
    %c0_58 = arith.constant 0 : index
    %65 = vector.load %arg13[%c3, %c0_57, %c0_58] : memref<5x40x50xf32, #tpu.memory_space<vmem>>, vector<1x40x50xf32>
    %66 = vector.shape_cast %65 : vector<1x40x50xf32> to vector<40x50xf32>
    %cst_59 = arith.constant dense<0.000000e+00> : vector<4x50xf32>
    %67 = tpu.matmul %64, %66, %cst_59 {dimension_numbers = #tpu.dot_dimension_numbers<[1], [0], [0], [1], [0, 0, 1, 1], [], []>} : vector<4x40xf32>, vector<40x50xf32>, vector<4x50xf32> -> vector<4x50xf32>
    %68 = arith.addf %63, %67 : vector<4x50xf32>
    %69 = vector.extract_strided_slice %46 {offsets = [16, 0], sizes = [4, 40], strides = [1, 1]} : vector<20x40xf32> to vector<4x40xf32>
    %c4 = arith.constant 4 : index
    %c0_60 = arith.constant 0 : index
    %c0_61 = arith.constant 0 : index
    %70 = vector.load %arg13[%c4, %c0_60, %c0_61] : memref<5x40x50xf32, #tpu.memory_space<vmem>>, vector<1x40x50xf32>
    %71 = vector.shape_cast %70 : vector<1x40x50xf32> to vector<40x50xf32>
    %cst_62 = arith.constant dense<0.000000e+00> : vector<4x50xf32>
    %72 = tpu.matmul %69, %71, %cst_62 {dimension_numbers = #tpu.dot_dimension_numbers<[1], [0], [0], [1], [0, 0, 1, 1], [], []>} : vector<4x40xf32>, vector<40x50xf32>, vector<4x50xf32> -> vector<4x50xf32>
    %73 = arith.addf %68, %72 : vector<4x50xf32>
    %cst_63 = arith.constant 0.000000e+00 : f32
    %74 = vector.broadcast %cst_63 : f32 to vector<4x50xf32>
    %75 = arith.maximumf %73, %74 : vector<4x50xf32>
    %76 = vector.extract_strided_slice %75 {offsets = [0, 0], sizes = [2, 50], strides = [1, 1]} : vector<4x50xf32> to vector<2x50xf32>
    %77 = vector.extract_strided_slice %75 {offsets = [2, 0], sizes = [2, 50], strides = [1, 1]} : vector<4x50xf32> to vector<2x50xf32>
    %c0_64 = arith.constant 0 : index
    %c0_65 = arith.constant 0 : index
    %78 = vector.load %arg18[%c0_64, %c0_65] : memref<2x50xf32, #tpu.memory_space<vmem>>, vector<2x50xf32>
    tpu.vector_store %arg18[%c0_64, %c0_65], %76 {strides = array<i32>} : memref<2x50xf32, #tpu.memory_space<vmem>>, vector<2x50xf32>,
    %c0_66 = arith.constant 0 : index
    %c0_67 = arith.constant 0 : index
    %79 = vector.load %arg19[%c0_66, %c0_67] : memref<2x50xf32, #tpu.memory_space<vmem>>, vector<2x50xf32>
    tpu.vector_store %arg19[%c0_66, %c0_67], %77 {strides = array<i32>} : memref<2x50xf32, #tpu.memory_space<vmem>>, vector<2x50xf32>,
    %c0_68 = arith.constant 0 : index
    %c0_69 = arith.constant 0 : index
    %80 = vector.load %arg17[%c0_68, %c0_69] : memref<1x10xf32, #tpu.memory_space<vmem>>, vector<1x10xf32>
    %c0_70 = arith.constant 0 : index
    %c0_71 = arith.constant 0 : index
    %81 = vector.load %arg15[%c0_70, %c0_71] : memref<50x10xf32, #tpu.memory_space<vmem>>, vector<50x10xf32>
    %cst_72 = arith.constant dense<0.000000e+00> : vector<2x10xf32>
    %82 = tpu.matmul %76, %81, %cst_72 {dimension_numbers = #tpu.dot_dimension_numbers<[1], [0], [0], [1], [0, 0, 1, 1], [], []>} : vector<2x50xf32>, vector<50x10xf32>, vector<2x10xf32> -> vector<2x10xf32>
    %83 = vector.broadcast %80 : vector<1x10xf32> to vector<2x10xf32>
    %84 = arith.addf %83, %82 : vector<2x10xf32>
    %c0_73 = arith.constant 0 : index
    %c0_74 = arith.constant 0 : index
    %85 = vector.load %arg16[%c0_73, %c0_74] : memref<50x10xf32, #tpu.memory_space<vmem>>, vector<50x10xf32>
    %cst_75 = arith.constant dense<0.000000e+00> : vector<2x10xf32>
    %86 = tpu.matmul %77, %85, %cst_75 {dimension_numbers = #tpu.dot_dimension_numbers<[1], [0], [0], [1], [0, 0, 1, 1], [], []>} : vector<2x50xf32>, vector<50x10xf32>, vector<2x10xf32> -> vector<2x10xf32>
    %87 = arith.addf %84, %86 : vector<2x10xf32>
    %c0_76 = arith.constant 0 : index
    %c0_77 = arith.constant 0 : index
    %88 = vector.load %arg20[%c0_76, %c0_77] : memref<2x10xf32, #tpu.memory_space<vmem>>, vector<2x10xf32>
    tpu.vector_store %arg20[%c0_76, %c0_77], %87 {strides = array<i32>} : memref<2x10xf32, #tpu.memory_space<vmem>>, vector<2x10xf32>,
    return
  }
}

</mosaic_0001>

<bundles_post_ra>
// kernel: net_forward.1
= control target key start
LH: loop header
LB: loop body
LE: loop exit
PB: predicated region body
PF: predicated region fallthrough
CT: control target
= control target key end

     0   :  { %s4612_s0 = inlined_call_operand.vmem [shape: f32[96,42], index: 0, kind: input, shape index: {}]   ;;  %s4613_s1 = inlined_call_operand.vmem [shape: f32[42,120], index: 1, kind: input, shape index: {}]   ;;  %s4614_s2 = inlined_call_operand.vmem [shape: f32[1,120], index: 2, kind: input, shape index: {}]   ;;  %s4615_s3 = inlined_call_operand.vmem [shape: f32[120,96], index: 3, kind: input, shape index: {}]   ;;  %s4616_s4 = inlined_call_operand.vmem [shape: f32[120,96], index: 4, kind: input, shape index: {}]   ;;  %s4617_s5 = inlined_call_operand.vmem [shape: f32[120,60], index: 5, kind: input, shape index: {}]   ;;  %s4618_s6 = inlined_call_operand.vmem [shape: f32[120,60], index: 6, kind: input, shape index: {}]   ;;  %s4619_s7 = inlined_call_operand.vmem [shape: f32[3,60,80], index: 7, kind: input, shape index: {}]   ;;  %s4620_s8 = inlined_call_operand.vmem [shape: f32[1,80], index: 8, kind: input, shape index: {}]   ;;  %s4621_s9 = inlined_call_operand.vmem [shape: f32[20,40], index: 9, kind: input, shape index: {}]   ;;  %s4622_s10 = inlined_call_operand.vmem [shape: f32[20,40], index: 10, kind: input, shape index: {}]   ;;  %s4623_s11 = inlined_call_operand.vmem [shape: f32[80,40], index: 11, kind: input, shape index: {}]   ;;  %s4624_s12 = inlined_call_operand.vmem [shape: f32[80,40], index: 12, kind: input, shape index: {}]   ;;  %s4625_s13 = inlined_call_operand.vmem [shape: f32[5,40,50], index: 13, kind: input, shape index: {}]   ;;  %s4626_s14 = inlined_call_operand.vmem [shape: f32[1,50], index: 14, kind: input, shape index: {}]   ;;  %s4627_s15 = inlined_call_operand.vmem [shape: f32[50,10], index: 15, kind: input, shape index: {}]   ;;  %s4628_s16 = inlined_call_operand.vmem [shape: f32[50,10], index: 16, kind: input, shape index: {}]   ;;  %s4629_s17 = inlined_call_operand.vmem [shape: f32[1,10], index: 17, kind: input, shape index: {}]   ;;  %s4630_s18 = inlined_call_operand.hbm [shape: f32[2,50], index: 18, kind: output, shape index: {0}]   ;;  %s4631_s19 = inlined_call_operand.hbm [shape: f32[2,50], index: 19, kind: output, shape index: {1}]   ;;  %s4632_s20 = inlined_call_operand.hbm [shape: f32[2,10], index: 20, kind: output, shape index: {2}]  }
   0x1   :  { %4637 = sst [smem:[#allocation9_spill]] %s4612_s0 }
   0x2   :  { %4638 = sst [smem:[#allocation10_spill]] %s4613_s1 }
   0x3   :  { %4639 = sst [smem:[#allocation11_spill]] %s4614_s2 }
   0x4   :  { %4640 = sst [smem:[#allocation12_spill]] %s4615_s3 }
   0x5   :  { %4641 = sst [smem:[#allocation13_spill]] %s4616_s4 }
   0x6   :  { %26 = vsyncpa [#allocation3], 0  ;;  %s4642_s23 = sld [smem:[#allocation10_spill]]  ;;  %vm126_vm0 = vcmask 1041408   ;;  %vm89_vm1 = vcmask 343040  }
   0x7   :  { %s4643_s28 = sld [smem:[#allocation9_spill]] }
   0xc   :  { %v81_v0 = vld [vmem:[%s4642_s23 + $0x28] sm:$0x3]  ;;  %v80_v1 = vld [vmem:[%s4642_s23 + $0x20] sm:$0xff]  ;;  %v79_v2 = vld [vmem:[%s4642_s23 + $0x18] sm:$0xff] }
   0xd   :  { %2856 = vmatprep.subr.msk.mxu0 %vm126_vm0, %v81_v0  ;;  %v64_v3 = vld [vmem:[%s4643_s28] sm:$0xff]  ;;  %v78_v4 = vld [vmem:[%s4642_s23 + $0x10] sm:$0xff]  ;;  %v77_v5 = vld [vmem:[%s4642_s23 + $0x8] sm:$0xff] }
   0xe   :  { %2857 = vmatpush3.msk.msra.mxu0 %vm126_vm0, %v81_v0  ;;  %2868 = vmatprep.mubr.msk.f32.mxu0 %vm89_vm1, %v64_v3 }
   0xf   :  { %2858 = vmatprep.subr.mxu0 %v80_v1 }
  0x10   :  { %2859 = vmatpush3.msra.mxu0 %v80_v1 }
  0x11   :  { %2860 = vmatprep.subr.mxu0 %v79_v2 }
  0x12   :  { %2861 = vmatpush3.msra.mxu0 %v79_v2 }
  0x13   :  { %27 = vsyncpa [#allocation5], 0  ;;  %2862 = vmatprep.subr.mxu0 %v78_v4  ;;  %v76_v6 = vld [vmem:[%s4642_s23] sm:$0xff]  ;;  %v65_v7 = vld [vmem:[%s4643_s28 + $0x8] sm:$0xff]  ;;  %v3531_v18 = vmov 0.0   ;;  %vm3532_vm2 = vmmov 0  }
  0x14   :  { %2863 = vmatpush3.msra.mxu0 %v78_v4  ;;  %v66_v8 = vld [vmem:[%s4643_s28 + $0x10] sm:$0xff]  ;;  %v67_v9 = vld [vmem:[%s4643_s28 + $0x18] sm:$0xff]  ;;  %v68_v10 = vld [vmem:[%s4643_s28 + $0x20] sm:$0xff]  ;;  %2886 = vmatprep.subr.mxu1 %v3531_v18  ;;  %s4644_s29 = sld [smem:[#allocation11_spill]]  ;;  %vm270_vm3 = vcmask 785408   ;;  %vm686_vm4 = vcmask 982016  }
  0x15   :  { %2864 = vmatprep.subr.mxu0 %v77_v5  ;;  %v69_v11 = vld [vmem:[%s4643_s28 + $0x28] sm:$0xff]  ;;  %v70_v12 = vld [vmem:[%s4643_s28 + $0x30] sm:$0xff]  ;;  %v71_v13 = vld [vmem:[%s4643_s28 + $0x38] sm:$0xff]  ;;  %2910 = vmatprep.mubr.msk.f32.mxu1 %vm3532_vm2, %v3531_v18  ;;  %s4645_s21 = sld [smem:[#allocation12_spill]]  ;;  %vm1082_vm5 = vcmask 1043456   ;;  %vm1066_vm6 = vcmask 490496  }
  0x16   :  { %2865 = vmatpush3.msra.mxu0 %v77_v5  ;;  %v72_v14 = vld [vmem:[%s4643_s28 + $0x40] sm:$0xff]  ;;  %v73_v15 = vld [vmem:[%s4643_s28 + $0x48] sm:$0xff]  ;;  %v74_v16 = vld [vmem:[%s4643_s28 + $0x50] sm:$0xff]  ;;  %s4646_s24 = sld [smem:[#allocation13_spill]]  ;;  %vm1434_vm7 = vcmask 326656   ;;  %vm1629_vm8 = vcmask 654336  }
  0x17   :  { %2866 = vmatprep.subr.mxu0 %v76_v6  ;;  %v75_v17 = vld [vmem:[%s4643_s28 + $0x58] sm:$0xff]  ;;  %v685_v46 = vld [vmem:[%s4617_s5 + $0x70] sm:$0xff]  ;;  %v684_v50 = vld [vmem:[%s4617_s5 + $0x68] sm:$0xff]  ;;  %vm2234_vm9 = vcmask 408576   ;;  %vm2224_vm10 = vcmask 404482   ;;  %vm2222_vm11 = vcmask 402432  }
  0x18   :  { %2867 = vmatpush3.msra.mxu0 %v76_v6  ;;  %v886_v47 = vld [vmem:[%s4618_s6 + $0x70] sm:$0xff]  ;;  %v885_v51 = vld [vmem:[%s4618_s6 + $0x68] sm:$0xff]  ;;  %v683_v54 = vld [vmem:[%s4617_s5 + $0x60] sm:$0xff] }
  0x19   :  { %2869 = vmatmul.mubr.msk.f32.vlgmr.msra.gmra.mxu0 %vm89_vm1, %v65_v7  ;;  %2955 = vmatprep.subr.mxu0 %v3531_v18  ;;  %v884_v55 = vld [vmem:[%s4618_s6 + $0x60] sm:$0xff]  ;;  %v682_v58 = vld [vmem:[%s4617_s5 + $0x58] sm:$0xff]  ;;  %v681_v62 = vld [vmem:[%s4617_s5 + $0x50] sm:$0xff] }
  0x1a   :  { %2871 = vmatprep.mubr.msk.f32.mxu0 %vm89_vm1, %v66_v8  ;;  %v2445_v29 = vld [vmem:[%s4644_s29] ss:$0 sm:$0xff]  ;;  %v883_v59 = vld [vmem:[%s4618_s6 + $0x58] sm:$0xff]  ;;  %v882_v63 = vld [vmem:[%s4618_s6 + $0x50] sm:$0xff] }
  0x1b   :  { %v255_v44 = vld [vmem:[%s4645_s21] sm:$0xff]  ;;  %v256_v48 = vld [vmem:[%s4645_s21 + $0x8] sm:$0xff]  ;;  %v257_v52 = vld [vmem:[%s4645_s21 + $0x10] sm:$0xff] }
  0x1c   :  { %v456_v45 = vld [vmem:[%s4646_s24] sm:$0xff]  ;;  %v457_v49 = vld [vmem:[%s4646_s24 + $0x8] sm:$0xff]  ;;  %v458_v53 = vld [vmem:[%s4646_s24 + $0x10] sm:$0xff] }
  0x1d   :  { %2872 = vmatmul.mubr.msk.f32.gmra.mxu0 %vm89_vm1, %v67_v9  ;;  %v258_v56 = vld [vmem:[%s4645_s21 + $0x18] sm:$0xff]  ;;  %v259_v60 = vld [vmem:[%s4645_s21 + $0x20] sm:$0xff]  ;;  %v260_v0 = vld [vmem:[%s4645_s21 + $0x28] sm:$0xff] }
  0x1e   :  { %2874 = vmatprep.mubr.msk.f32.mxu0 %vm89_vm1, %v68_v10  ;;  %v459_v57 = vld [vmem:[%s4646_s24 + $0x18] sm:$0xff]  ;;  %v460_v61 = vld [vmem:[%s4646_s24 + $0x20] sm:$0xff]  ;;  %v461_v1 = vld [vmem:[%s4646_s24 + $0x28] sm:$0xff] }
  0x1f   :  { %v680_v2 = vld [vmem:[%s4617_s5 + $0x48] sm:$0xff]  ;;  %v261_v4 = vld [vmem:[%s4645_s21 + $0x30] sm:$0xff]  ;;  %v679_v6 = vld [vmem:[%s4617_s5 + $0x40] sm:$0xff] }
  0x20   :  { %v881_v3 = vld [vmem:[%s4618_s6 + $0x48] sm:$0xff]  ;;  %v462_v5 = vld [vmem:[%s4646_s24 + $0x30] sm:$0xff]  ;;  %v880_v7 = vld [vmem:[%s4618_s6 + $0x40] sm:$0xff] }
  0x21   :  { %2875 = vmatmul.mubr.msk.f32.gmra.mxu0 %vm89_vm1, %v69_v11  ;;  %v262_v8 = vld [vmem:[%s4645_s21 + $0x38] sm:$0xff] }
  0x22   :  { %2877 = vmatprep.mubr.msk.f32.mxu0 %vm89_vm1, %v70_v12  ;;  %v463_v9 = vld [vmem:[%s4646_s24 + $0x38] sm:$0xff]  ;;  %v263_v12 = vld [vmem:[%s4645_s21 + $0x40] sm:$0xff] }
  0x23   :  { %v678_v10 = vld [vmem:[%s4617_s5 + $0x38] sm:$0xff] }
  0x24   :  { %v879_v11 = vld [vmem:[%s4618_s6 + $0x38] sm:$0xff] }
  0x25   :  { %2878 = vmatmul.mubr.msk.f32.gmra.mxu0 %vm89_vm1, %v71_v13  ;;  %v464_v13 = vld [vmem:[%s4646_s24 + $0x40] sm:$0xff] }
  0x26   :  { %2880 = vmatprep.mubr.msk.f32.mxu0 %vm89_vm1, %v72_v14  ;;  %v677_v14 = vld [vmem:[%s4617_s5 + $0x30] sm:$0xff] }
  0x29   :  { %2881 = vmatmul.mubr.msk.f32.gmra.mxu0 %vm89_vm1, %v73_v15  ;;  %v878_v15 = vld [vmem:[%s4618_s6 + $0x30] sm:$0xff] }
  0x2a   :  { %2883 = vmatprep.mubr.msk.f32.mxu0 %vm89_vm1, %v74_v16  ;;  %v264_v16 = vld [vmem:[%s4645_s21 + $0x48] sm:$0xff] }
  0x2d   :  { %2884 = vmatmul.mubr.msk.f32.gmra.mxu0 %vm89_vm1, %v75_v17  ;;  %v465_v17 = vld [vmem:[%s4646_s24 + $0x48] sm:$0xff] }
  0x2e   :  { %2979 = vmatprep.mubr.msk.f32.mxu0 %vm3532_vm2, %v3531_v18 }
  0xd9   :  { %v2870_v19 = vpop.f32.mrf.mxu0 }
  0xda   :  { %v202_v42 = vadd.f32 %v2870_v19, %v2445_v29  ;;  %v676_v19 = vld [vmem:[%s4617_s5 + $0x28] sm:$0xff] }
  0xdb   :  { %v3715_v20 = vpop.f32.mrf.mxu0 }
  0xdc   :  { %v197_v43 = vadd.f32 %v2445_v29, %v3715_v20  ;;  %v877_v20 = vld [vmem:[%s4618_s6 + $0x28] sm:$0xff] }
  0xdd   :  { %v2873_v21 = vpop.f32.mrf.mxu0 }
  0xde   :  { %v212_v40 = vadd.f32 %v2873_v21, %v2445_v29  ;;  %v265_v21 = vld [vmem:[%s4645_s21 + $0x50] sm:$0xff] }
  0xdf   :  { %v206_v22 = vpop.f32.mrf.mxu0 }
  0xe0   :  { %v207_v41 = vadd.f32 %v2445_v29, %v206_v22  ;;  %v466_v22 = vld [vmem:[%s4646_s24 + $0x50] sm:$0xff] }
  0xe1   :  { %v2876_v23 = vpop.f32.mrf.mxu0 }
  0xe2   :  { %v222_v38 = vadd.f32 %v2876_v23, %v2445_v29  ;;  %v675_v23 = vld [vmem:[%s4617_s5 + $0x20] sm:$0xff] }
  0xe3   :  { %v216_v24 = vpop.f32.mrf.mxu0 }
  0xe4   :  { %v217_v39 = vadd.f32 %v2445_v29, %v216_v24  ;;  %v876_v24 = vld [vmem:[%s4618_s6 + $0x20] sm:$0xff] }
  0xe5   :  { %v2879_v25 = vpop.f32.mrf.mxu0 }
  0xe6   :  { %v232_v36 = vadd.f32 %v2879_v25, %v2445_v29  ;;  %v266_v25 = vld [vmem:[%s4645_s21 + $0x58] sm:$0xff] }
  0xe7   :  { %v226_v26 = vpop.f32.mrf.mxu0 }
  0xe8   :  { %v227_v37 = vadd.f32 %v2445_v29, %v226_v26  ;;  %v467_v26 = vld [vmem:[%s4646_s24 + $0x58] sm:$0xff] }
  0xe9   :  { %v2882_v27 = vpop.f32.mrf.mxu0 }
  0xea   :  { %v242_v34 = vadd.f32 %v2882_v27, %v2445_v29  ;;  %v674_v27 = vld [vmem:[%s4617_s5 + $0x18] sm:$0xff] }
  0xeb   :  { %v236_v28 = vpop.f32.mrf.mxu0 }
  0xec   :  { %v237_v35 = vadd.f32 %v2445_v29, %v236_v28  ;;  %v875_v28 = vld [vmem:[%s4618_s6 + $0x18] sm:$0xff] }
  0xed   :  { %v2885_v30 = vpop.f32.mrf.mxu0 }
  0xee   :  { %v252_v31 = vadd.f32 %v2885_v30, %v2445_v29  ;;  %v468_v30 = vld [vmem:[%s4646_s24 + $0x60] sm:$0xff] }
  0xef   :  { %v246_v32 = vpop.f32.mrf.mxu0 }
  0xf0   :  { %v247_v33 = vadd.f32 %v2445_v29, %v246_v32  ;;  %2887 = vmatpush3.msra.mxu1 %v252_v31  ;;  %2956 = vmatpush3.msra.mxu0 %v252_v31  ;;  %v267_v29 = vld [vmem:[%s4645_s21 + $0x60] sm:$0xff]  ;;  %v673_v31 = vld [vmem:[%s4617_s5 + $0x10] sm:$0xff] }
  0xf1   :  { %2888 = vmatprep.subr.mxu1 %v3531_v18  ;;  %2957 = vmatprep.subr.mxu0 %v3531_v18  ;;  %v874_v32 = vld [vmem:[%s4618_s6 + $0x10] sm:$0xff] }
  0xf2   :  { %2889 = vmatpush3.msra.mxu1 %v247_v33  ;;  %2958 = vmatpush3.msra.mxu0 %v247_v33  ;;  %v268_v33 = vld [vmem:[%s4645_s21 + $0x68] sm:$0xff] }
  0xf3   :  { %2890 = vmatprep.subr.mxu1 %v3531_v18  ;;  %2959 = vmatprep.subr.mxu0 %v3531_v18 }
  0xf4   :  { %2891 = vmatpush3.msra.mxu1 %v242_v34  ;;  %2960 = vmatpush3.msra.mxu0 %v242_v34  ;;  %v469_v34 = vld [vmem:[%s4646_s24 + $0x68] sm:$0xff] }
  0xf5   :  { %2892 = vmatprep.subr.mxu1 %v3531_v18  ;;  %2961 = vmatprep.subr.mxu0 %v3531_v18 }
  0xf6   :  { %2893 = vmatpush3.msra.mxu1 %v237_v35  ;;  %2962 = vmatpush3.msra.mxu0 %v237_v35  ;;  %v269_v35 = vld [vmem:[%s4645_s21 + $0x70] sm:$0xff] }
  0xf7   :  { %2894 = vmatprep.subr.mxu1 %v3531_v18  ;;  %2963 = vmatprep.subr.mxu0 %v3531_v18 }
  0xf8   :  { %2895 = vmatpush3.msra.mxu1 %v232_v36  ;;  %2964 = vmatpush3.msra.mxu0 %v232_v36  ;;  %v470_v36 = vld [vmem:[%s4646_s24 + $0x70] sm:$0xff] }
  0xf9   :  { %2896 = vmatprep.subr.mxu1 %v3531_v18  ;;  %2965 = vmatprep.subr.mxu0 %v3531_v18 }
  0xfa   :  { %2897 = vmatpush3.msra.mxu1 %v227_v37  ;;  %2966 = vmatpush3.msra.mxu0 %v227_v37  ;;  %v672_v37 = vld [vmem:[%s4617_s5 + $0x8] sm:$0xff] }
  0xfb   :  { %2898 = vmatprep.subr.mxu1 %v3531_v18  ;;  %2967 = vmatprep.subr.mxu0 %v3531_v18 }
  0xfc   :  { %2899 = vmatpush3.msra.mxu1 %v222_v38  ;;  %2968 = vmatpush3.msra.mxu0 %v222_v38  ;;  %v873_v38 = vld [vmem:[%s4618_s6 + $0x8] sm:$0xff] }
  0xfd   :  { %2900 = vmatprep.subr.mxu1 %v3531_v18  ;;  %2969 = vmatprep.subr.mxu0 %v3531_v18 }
  0xfe   :  { %2901 = vmatpush3.msra.mxu1 %v217_v39  ;;  %2970 = vmatpush3.msra.mxu0 %v217_v39  ;;  %v671_v39 = vld [vmem:[%s4617_s5] sm:$0xff] }
  0xff   :  { %2902 = vmatprep.subr.mxu1 %v3531_v18  ;;  %2971 = vmatprep.subr.mxu0 %v3531_v18 }
 0x100   :  { %2903 = vmatpush3.msra.mxu1 %v212_v40  ;;  %2972 = vmatpush3.msra.mxu0 %v212_v40  ;;  %v872_v40 = vld [vmem:[%s4618_s6] sm:$0xff] }
 0x101   :  { %2904 = vmatprep.subr.mxu1 %v3531_v18  ;;  %2973 = vmatprep.subr.mxu0 %v3531_v18 }
 0x102   :  { %2905 = vmatpush3.msra.mxu1 %v207_v41  ;;  %2974 = vmatpush3.msra.mxu0 %v207_v41 }
 0x103   :  { %2906 = vmatprep.subr.mxu1 %v3531_v18  ;;  %2975 = vmatprep.subr.mxu0 %v3531_v18 }
 0x104   :  { %2907 = vmatpush3.msra.mxu1 %v202_v42  ;;  %2976 = vmatpush3.msra.mxu0 %v202_v42 }
 0x105   :  { %2908 = vmatprep.subr.mxu1 %v3531_v18  ;;  %2977 = vmatprep.subr.mxu0 %v3531_v18 }
 0x106   :  { %2909 = vmatpush3.msra.mxu1 %v197_v43  ;;  %2978 = vmatpush3.msra.mxu0 %v197_v43 }
 0x107   :  { %2911 = vmatmul.mubr.msk.f32.vlgmr.msra.gmra.mxu1 %vm270_vm3, %v255_v44  ;;  %2980 = vmatmul.mubr.msk.f32.vlgmr.msra.gmra.mxu0 %vm270_vm3, %v456_v45 }
 0x108   :  { %2913 = vmatprep.mubr.msk.f32.mxu1 %vm3532_vm2, %v3531_v18  ;;  %2982 = vmatprep.mubr.msk.f32.mxu0 %vm3532_vm2, %v3531_v18 }
 0x109   :  { %3024 = vmatprep.subr.mxu1 %v3531_v18  ;;  %3099 = vmatprep.subr.mxu0 %v3531_v18 }
 0x10a   :  { %3025 = vmatpush3.msra.mxu1 %v685_v46  ;;  %3100 = vmatpush3.msra.mxu0 %v886_v47  ;;  %v1065_v46 = vld [vmem:[%s4619_s7 + $0x38] sm:$0xf] }
 0x10b   :  { %2914 = vmatmul.mubr.msk.f32.gmra.mxu1 %vm270_vm3, %v256_v48  ;;  %2983 = vmatmul.mubr.msk.f32.gmra.mxu0 %vm270_vm3, %v457_v49  ;;  %v2533_v47 = vld [vmem:[%s4619_s7 + $0x78] sm:$0xf] }
 0x10c   :  { %2916 = vmatprep.mubr.msk.f32.mxu1 %vm3532_vm2, %v3531_v18  ;;  %2985 = vmatprep.mubr.msk.f32.mxu0 %vm3532_vm2, %v3531_v18 }
 0x10d   :  { %3026 = vmatprep.subr.mxu1 %v3531_v18  ;;  %3101 = vmatprep.subr.mxu0 %v3531_v18 }
 0x10e   :  { %3027 = vmatpush3.msra.mxu1 %v684_v50  ;;  %3102 = vmatpush3.msra.mxu0 %v885_v51 }
 0x10f   :  { %2917 = vmatmul.mubr.msk.f32.gmra.mxu1 %vm270_vm3, %v257_v52  ;;  %2986 = vmatmul.mubr.msk.f32.gmra.mxu0 %vm270_vm3, %v458_v53  ;;  %v1064_v53 = vld [vmem:[%s4619_s7 + $0x30] sm:$0xff] }
 0x110   :  { %2919 = vmatprep.mubr.msk.f32.mxu1 %vm3532_vm2, %v3531_v18  ;;  %2988 = vmatprep.mubr.msk.f32.mxu0 %vm3532_vm2, %v3531_v18 }
 0x111   :  { %3028 = vmatprep.subr.mxu1 %v3531_v18  ;;  %3103 = vmatprep.subr.mxu0 %v3531_v18 }
 0x112   :  { %3029 = vmatpush3.msra.mxu1 %v683_v54  ;;  %3104 = vmatpush3.msra.mxu0 %v884_v55 }
 0x113   :  { %2920 = vmatmul.mubr.msk.f32.gmra.mxu1 %vm270_vm3, %v258_v56  ;;  %2989 = vmatmul.mubr.msk.f32.gmra.mxu0 %vm270_vm3, %v459_v57 }
 0x114   :  { %2922 = vmatprep.mubr.msk.f32.mxu1 %vm3532_vm2, %v3531_v18  ;;  %2991 = vmatprep.mubr.msk.f32.mxu0 %vm3532_vm2, %v3531_v18 }
 0x115   :  { %3030 = vmatprep.subr.mxu1 %v3531_v18  ;;  %3105 = vmatprep.subr.mxu0 %v3531_v18 }
 0x116   :  { %3031 = vmatpush3.msra.mxu1 %v682_v58  ;;  %3106 = vmatpush3.msra.mxu0 %v883_v59  ;;  %v1063_v59 = vld [vmem:[%s4619_s7 + $0x28] sm:$0xff] }
 0x117   :  { %2923 = vmatmul.mubr.msk.f32.gmra.mxu1 %vm270_vm3, %v259_v60  ;;  %2992 = vmatmul.mubr.msk.f32.gmra.mxu0 %vm270_vm3, %v460_v61 }
 0x118   :  { %2925 = vmatprep.mubr.msk.f32.mxu1 %vm3532_vm2, %v3531_v18  ;;  %2994 = vmatprep.mubr.msk.f32.mxu0 %vm3532_vm2, %v3531_v18 }
 0x119   :  { %3032 = vmatprep.subr.mxu1 %v3531_v18  ;;  %3107 = vmatprep.subr.mxu0 %v3531_v18 }
 0x11a   :  { %3033 = vmatpush3.msra.mxu1 %v681_v62  ;;  %3108 = vmatpush3.msra.mxu0 %v882_v63 }
 0x11b   :  { %2926 = vmatmul.mubr.msk.f32.gmra.mxu1 %vm270_vm3, %v260_v0  ;;  %2995 = vmatmul.mubr.msk.f32.gmra.mxu0 %vm270_vm3, %v461_v1  ;;  %v1062_v1 = vld [vmem:[%s4619_s7 + $0x20] sm:$0xff] }
 0x11c   :  { %2928 = vmatprep.mubr.msk.f32.mxu1 %vm3532_vm2, %v3531_v18  ;;  %2997 = vmatprep.mubr.msk.f32.mxu0 %vm3532_vm2, %v3531_v18 }
 0x11d   :  { %3034 = vmatprep.subr.mxu1 %v3531_v18  ;;  %3109 = vmatprep.subr.mxu0 %v3531_v18 }
 0x11e   :  { %3035 = vmatpush3.msra.mxu1 %v680_v2  ;;  %3110 = vmatpush3.msra.mxu0 %v881_v3 }
 0x11f   :  { %2929 = vmatmul.mubr.msk.f32.gmra.mxu1 %vm270_vm3, %v261_v4  ;;  %2998 = vmatmul.mubr.msk.f32.gmra.mxu0 %vm270_vm3, %v462_v5 }
 0x120   :  { %2931 = vmatprep.mubr.msk.f32.mxu1 %vm3532_vm2, %v3531_v18  ;;  %3000 = vmatprep.mubr.msk.f32.mxu0 %vm3532_vm2, %v3531_v18 }
 0x121   :  { %3036 = vmatprep.subr.mxu1 %v3531_v18  ;;  %3111 = vmatprep.subr.mxu0 %v3531_v18 }
 0x122   :  { %3037 = vmatpush3.msra.mxu1 %v679_v6  ;;  %3112 = vmatpush3.msra.mxu0 %v880_v7  ;;  %v1061_v7 = vld [vmem:[%s4619_s7 + $0x18] sm:$0xff] }
 0x123   :  { %2932 = vmatmul.mubr.msk.f32.gmra.mxu1 %vm270_vm3, %v262_v8  ;;  %3001 = vmatmul.mubr.msk.f32.gmra.mxu0 %vm270_vm3, %v463_v9 }
 0x124   :  { %2934 = vmatprep.mubr.msk.f32.mxu1 %vm3532_vm2, %v3531_v18  ;;  %3003 = vmatprep.mubr.msk.f32.mxu0 %vm3532_vm2, %v3531_v18 }
 0x125   :  { %3038 = vmatprep.subr.mxu1 %v3531_v18  ;;  %3113 = vmatprep.subr.mxu0 %v3531_v18 }
 0x126   :  { %3039 = vmatpush3.msra.mxu1 %v678_v10  ;;  %3114 = vmatpush3.msra.mxu0 %v879_v11 }
 0x127   :  { %2935 = vmatmul.mubr.msk.f32.gmra.mxu1 %vm270_vm3, %v263_v12  ;;  %3004 = vmatmul.mubr.msk.f32.gmra.mxu0 %vm270_vm3, %v464_v13 }
 0x128   :  { %2937 = vmatprep.mubr.msk.f32.mxu1 %vm3532_vm2, %v3531_v18  ;;  %3006 = vmatprep.mubr.msk.f32.mxu0 %vm3532_vm2, %v3531_v18 }
 0x129   :  { %3040 = vmatprep.subr.mxu1 %v3531_v18  ;;  %3115 = vmatprep.subr.mxu0 %v3531_v18 }
 0x12a   :  { %3041 = vmatpush3.msra.mxu1 %v677_v14  ;;  %3116 = vmatpush3.msra.mxu0 %v878_v15 }
 0x12b   :  { %2938 = vmatmul.mubr.msk.f32.gmra.mxu1 %vm270_vm3, %v264_v16  ;;  %3007 = vmatmul.mubr.msk.f32.gmra.mxu0 %vm270_vm3, %v465_v17 }
 0x12c   :  { %2940 = vmatprep.mubr.msk.f32.mxu1 %vm3532_vm2, %v3531_v18  ;;  %3009 = vmatprep.mubr.msk.f32.mxu0 %vm3532_vm2, %v3531_v18 }
 0x12d   :  { %3042 = vmatprep.subr.mxu1 %v3531_v18  ;;  %3117 = vmatprep.subr.mxu0 %v3531_v18 }
 0x12e   :  { %3043 = vmatpush3.msra.mxu1 %v676_v19  ;;  %3118 = vmatpush3.msra.mxu0 %v877_v20 }
 0x12f   :  { %2941 = vmatmul.mubr.msk.f32.gmra.mxu1 %vm270_vm3, %v265_v21  ;;  %3010 = vmatmul.mubr.msk.f32.gmra.mxu0 %vm270_vm3, %v466_v22 }
 0x130   :  { %2943 = vmatprep.mubr.msk.f32.mxu1 %vm3532_vm2, %v3531_v18  ;;  %3012 = vmatprep.mubr.msk.f32.mxu0 %vm3532_vm2, %v3531_v18 }
 0x131   :  { %3044 = vmatprep.subr.mxu1 %v3531_v18  ;;  %3119 = vmatprep.subr.mxu0 %v3531_v18 }
 0x132   :  { %3045 = vmatpush3.msra.mxu1 %v675_v23  ;;  %3120 = vmatpush3.msra.mxu0 %v876_v24 }
 0x133   :  { %2944 = vmatmul.mubr.msk.f32.gmra.mxu1 %vm270_vm3, %v266_v25  ;;  %3013 = vmatmul.mubr.msk.f32.gmra.mxu0 %vm270_vm3, %v467_v26 }
 0x134   :  { %2946 = vmatprep.mubr.msk.f32.mxu1 %vm3532_vm2, %v3531_v18  ;;  %3015 = vmatprep.mubr.msk.f32.mxu0 %vm3532_vm2, %v3531_v18 }
 0x135   :  { %3046 = vmatprep.subr.mxu1 %v3531_v18  ;;  %3121 = vmatprep.subr.mxu0 %v3531_v18 }
 0x136   :  { %3047 = vmatpush3.msra.mxu1 %v674_v27  ;;  %3122 = vmatpush3.msra.mxu0 %v875_v28 }
 0x137   :  { %2947 = vmatmul.mubr.msk.f32.gmra.mxu1 %vm270_vm3, %v267_v29  ;;  %3016 = vmatmul.mubr.msk.f32.gmra.mxu0 %vm270_vm3, %v468_v30 }
 0x138   :  { %2949 = vmatprep.mubr.msk.f32.mxu1 %vm3532_vm2, %v3531_v18  ;;  %3018 = vmatprep.mubr.msk.f32.mxu0 %vm3532_vm2, %v3531_v18 }
 0x139   :  { %3048 = vmatprep.subr.mxu1 %v3531_v18  ;;  %3123 = vmatprep.subr.mxu0 %v3531_v18 }
 0x13a   :  { %3049 = vmatpush3.msra.mxu1 %v673_v31  ;;  %3124 = vmatpush3.msra.mxu0 %v874_v32 }
 0x13b   :  { %2950 = vmatmul.mubr.msk.f32.gmra.mxu1 %vm270_vm3, %v268_v33  ;;  %3019 = vmatmul.mubr.msk.f32.gmra.mxu0 %vm270_vm3, %v469_v34 }
 0x13c   :  { %2952 = vmatprep.mubr.msk.f32.mxu1 %vm3532_vm2, %v3531_v18  ;;  %3021 = vmatprep.mubr.msk.f32.mxu0 %vm3532_vm2, %v3531_v18 }
 0x13d   :  { %3050 = vmatprep.subr.mxu1 %v3531_v18  ;;  %3125 = vmatprep.subr.mxu0 %v3531_v18 }
 0x13e   :  { %3051 = vmatpush3.msra.mxu1 %v672_v37  ;;  %3126 = vmatpush3.msra.mxu0 %v873_v38 }
 0x13f   :  { %2953 = vmatmul.mubr.msk.f32.gmra.mxu1 %vm270_vm3, %v269_v35  ;;  %3022 = vmatmul.mubr.msk.f32.gmra.mxu0 %vm270_vm3, %v470_v36 }
 0x140   :  { %3054 = vmatprep.mubr.msk.f32.mxu1 %vm3532_vm2, %v3531_v18  ;;  %3129 = vmatprep.mubr.msk.f32.mxu0 %vm3532_vm2, %v3531_v18 }
 0x141   :  { %3052 = vmatprep.subr.mxu1 %v3531_v18  ;;  %3127 = vmatprep.subr.mxu0 %v3531_v18 }
 0x142   :  { %3053 = vmatpush3.msra.mxu1 %v671_v39  ;;  %3128 = vmatpush3.msra.mxu0 %v872_v40 }
 0x143   :  { %3174 = vmatprep.subr.mxu1 %v3531_v18  ;;  %3205 = vmatprep.subr.mxu0 %v3531_v18 }
 0x1c7   :  { %v382_v41 = vpop.f32.mrf.mxu1  ;;  %v582_v42 = vpop.f32.mrf.mxu0 }
 0x1c8   :  { %v656_v43 = vmax.f32 %v382_v41, %v582_v42 }
 0x1c9   :  { %v2912_v44 = vpop.f32.mrf.mxu1  ;;  %v2981_v45 = vpop.f32.mrf.mxu0 }
 0x1ca   :  { %3055 = vmatmul.mubr.msk.f32.vlgmr.msra.gmra.mxu1 %vm686_vm4, %v656_v43  ;;  %3130 = vmatmul.mubr.msk.f32.vlgmr.msra.gmra.mxu0 %vm686_vm4, %v656_v43 }
 0x1cb   :  { %v387_v48 = vpop.f32.mrf.mxu1  ;;  %v587_v49 = vpop.f32.mrf.mxu0  ;;  %3057 = vmatprep.mubr.msk.f32.mxu1 %vm3532_vm2, %v3531_v18  ;;  %3132 = vmatprep.mubr.msk.f32.mxu0 %vm3532_vm2, %v3531_v18 }
 0x1cc   :  { %v657_v50 = vmax.f32 %v387_v48, %v587_v49  ;;  %3175 = vmatpush3.msk.msra.mxu1 %vm1082_vm5, %v1065_v46  ;;  %3206 = vmatpush3.msk.msra.mxu0 %vm1082_vm5, %v2533_v47 }
 0x1cd   :  { %v2915_v51 = vpop.f32.mrf.mxu1  ;;  %v2984_v52 = vpop.f32.mrf.mxu0  ;;  %3176 = vmatprep.subr.mxu1 %v3531_v18  ;;  %3207 = vmatprep.subr.mxu0 %v3531_v18 }
 0x1ce   :  { %3058 = vmatmul.mubr.msk.f32.gmra.mxu1 %vm686_vm4, %v657_v50  ;;  %3133 = vmatmul.mubr.msk.f32.gmra.mxu0 %vm686_vm4, %v657_v50 }
 0x1cf   :  { %v392_v54 = vpop.f32.mrf.mxu1  ;;  %v592_v55 = vpop.f32.mrf.mxu0  ;;  %3060 = vmatprep.mubr.msk.f32.mxu1 %vm3532_vm2, %v3531_v18  ;;  %3135 = vmatprep.mubr.msk.f32.mxu0 %vm3532_vm2, %v3531_v18 }
 0x1d0   :  { %v658_v56 = vmax.f32 %v392_v54, %v592_v55  ;;  %3177 = vmatpush3.msra.mxu1 %v1064_v53 }
 0x1d1   :  { %v2918_v57 = vpop.f32.mrf.mxu1  ;;  %v2987_v58 = vpop.f32.mrf.mxu0  ;;  %3178 = vmatprep.subr.mxu1 %v3531_v18 }
 0x1d2   :  { %3061 = vmatmul.mubr.msk.f32.gmra.mxu1 %vm686_vm4, %v658_v56  ;;  %3136 = vmatmul.mubr.msk.f32.gmra.mxu0 %vm686_vm4, %v658_v56 }
 0x1d3   :  { %v397_v60 = vpop.f32.mrf.mxu1  ;;  %v597_v61 = vpop.f32.mrf.mxu0  ;;  %3063 = vmatprep.mubr.msk.f32.mxu1 %vm3532_vm2, %v3531_v18  ;;  %3138 = vmatprep.mubr.msk.f32.mxu0 %vm3532_vm2, %v3531_v18 }
 0x1d4   :  { %v659_v62 = vmax.f32 %v397_v60, %v597_v61  ;;  %3179 = vmatpush3.msra.mxu1 %v1063_v59  ;;  %v1060_v59 = vld [vmem:[%s4619_s7 + $0x10] sm:$0xff]  ;;  %v1059_v60 = vld [vmem:[%s4619_s7 + $0x8] sm:$0xff] }
 0x1d5   :  { %v2921_v63 = vpop.f32.mrf.mxu1  ;;  %v2990_v0 = vpop.f32.mrf.mxu0  ;;  %3180 = vmatprep.subr.mxu1 %v3531_v18  ;;  %v2532_v61 = vld [vmem:[%s4619_s7 + $0x70] sm:$0xff] }
 0x1d6   :  { %3064 = vmatmul.mubr.msk.f32.gmra.mxu1 %vm686_vm4, %v659_v62  ;;  %3139 = vmatmul.mubr.msk.f32.gmra.mxu0 %vm686_vm4, %v659_v62  ;;  %v1058_v62 = vld [vmem:[%s4619_s7] sm:$0xff]  ;;  %v2531_v63 = vld [vmem:[%s4619_s7 + $0x68] sm:$0xff] }
 0x1d7   :  { %v402_v2 = vpop.f32.mrf.mxu1  ;;  %v602_v3 = vpop.f32.mrf.mxu0  ;;  %3066 = vmatprep.mubr.msk.f32.mxu1 %vm3532_vm2, %v3531_v18  ;;  %3141 = vmatprep.mubr.msk.f32.mxu0 %vm3532_vm2, %v3531_v18  ;;  %v2530_v0 = vld [vmem:[%s4619_s7 + $0x60] sm:$0xff] }
 0x1d8   :  { %v660_v4 = vmax.f32 %v402_v2, %v602_v3  ;;  %3181 = vmatpush3.msra.mxu1 %v1062_v1  ;;  %3208 = vmatpush3.msra.mxu0 %v2532_v61  ;;  %v2529_v1 = vld [vmem:[%s4619_s7 + $0x58] sm:$0xff]  ;;  %v2528_v2 = vld [vmem:[%s4619_s7 + $0x50] sm:$0xff]  ;;  %v2527_v3 = vld [vmem:[%s4619_s7 + $0x48] sm:$0xff] }
 0x1d9   :  { %v2924_v5 = vpop.f32.mrf.mxu1  ;;  %v2993_v6 = vpop.f32.mrf.mxu0  ;;  %3182 = vmatprep.subr.mxu1 %v3531_v18  ;;  %3209 = vmatprep.subr.mxu0 %v3531_v18 }
 0x1da   :  { %3067 = vmatmul.mubr.msk.f32.gmra.mxu1 %vm686_vm4, %v660_v4  ;;  %3142 = vmatmul.mubr.msk.f32.gmra.mxu0 %vm686_vm4, %v660_v4  ;;  %v2526_v4 = vld [vmem:[%s4619_s7 + $0x40] sm:$0xff] }
 0x1db   :  { %v407_v8 = vpop.f32.mrf.mxu1  ;;  %v607_v9 = vpop.f32.mrf.mxu0  ;;  %3069 = vmatprep.mubr.msk.f32.mxu1 %vm3532_vm2, %v3531_v18  ;;  %3144 = vmatprep.mubr.msk.f32.mxu0 %vm3532_vm2, %v3531_v18 }
 0x1dc   :  { %v661_v10 = vmax.f32 %v407_v8, %v607_v9  ;;  %3183 = vmatpush3.msra.mxu1 %v1061_v7  ;;  %3210 = vmatpush3.msra.mxu0 %v2531_v63 }
 0x1dd   :  { %v2927_v11 = vpop.f32.mrf.mxu1  ;;  %v2996_v12 = vpop.f32.mrf.mxu0  ;;  %3184 = vmatprep.subr.mxu1 %v3531_v18  ;;  %3211 = vmatprep.subr.mxu0 %v3531_v18 }
 0x1de   :  { %3070 = vmatmul.mubr.msk.f32.gmra.mxu1 %vm686_vm4, %v661_v10  ;;  %3145 = vmatmul.mubr.msk.f32.gmra.mxu0 %vm686_vm4, %v661_v10  ;;  %v2547_v11 = vld [vmem:[%s4619_s7 + $0xb8] sm:$0xf] }
 0x1df   :  { %v412_v13 = vpop.f32.mrf.mxu1  ;;  %v612_v14 = vpop.f32.mrf.mxu0  ;;  %3072 = vmatprep.mubr.msk.f32.mxu1 %vm3532_vm2, %v3531_v18  ;;  %3147 = vmatprep.mubr.msk.f32.mxu0 %vm3532_vm2, %v3531_v18 }
 0x1e0   :  { %v662_v15 = vmax.f32 %v412_v13, %v612_v14  ;;  %3185 = vmatpush3.msra.mxu1 %v1060_v59  ;;  %3212 = vmatpush3.msra.mxu0 %v2530_v0 }
 0x1e1   :  { %v2930_v16 = vpop.f32.mrf.mxu1  ;;  %v2999_v17 = vpop.f32.mrf.mxu0  ;;  %3186 = vmatprep.subr.mxu1 %v3531_v18  ;;  %3213 = vmatprep.subr.mxu0 %v3531_v18 }
 0x1e2   :  { %3073 = vmatmul.mubr.msk.f32.gmra.mxu1 %vm686_vm4, %v662_v15  ;;  %3148 = vmatmul.mubr.msk.f32.gmra.mxu0 %vm686_vm4, %v662_v15  ;;  %v2546_v15 = vld [vmem:[%s4619_s7 + $0xb0] sm:$0xff] }
 0x1e3   :  { %v417_v19 = vpop.f32.mrf.mxu1  ;;  %v617_v20 = vpop.f32.mrf.mxu0  ;;  %3075 = vmatprep.mubr.msk.f32.mxu1 %vm3532_vm2, %v3531_v18  ;;  %3150 = vmatprep.mubr.msk.f32.mxu0 %vm3532_vm2, %v3531_v18 }
 0x1e4   :  { %v663_v21 = vmax.f32 %v417_v19, %v617_v20  ;;  %3187 = vmatpush3.msra.mxu1 %v1059_v60  ;;  %3214 = vmatpush3.msra.mxu0 %v2529_v1  ;;  %v2545_v20 = vld [vmem:[%s4619_s7 + $0xa8] sm:$0xff] }
 0x1e5   :  { %v2933_v22 = vpop.f32.mrf.mxu1  ;;  %v3002_v23 = vpop.f32.mrf.mxu0  ;;  %3188 = vmatprep.subr.mxu1 %v3531_v18  ;;  %3215 = vmatprep.subr.mxu0 %v3531_v18 }
 0x1e6   :  { %3076 = vmatmul.mubr.msk.f32.gmra.mxu1 %vm686_vm4, %v663_v21  ;;  %3151 = vmatmul.mubr.msk.f32.gmra.mxu0 %vm686_vm4, %v663_v21 }
 0x1e7   :  { %v422_v24 = vpop.f32.mrf.mxu1  ;;  %v622_v25 = vpop.f32.mrf.mxu0  ;;  %3078 = vmatprep.mubr.msk.f32.mxu1 %vm3532_vm2, %v3531_v18  ;;  %3153 = vmatprep.mubr.msk.f32.mxu0 %vm3532_vm2, %v3531_v18 }
 0x1e8   :  { %v664_v26 = vmax.f32 %v422_v24, %v622_v25  ;;  %3189 = vmatpush3.msra.mxu1 %v1058_v62  ;;  %3216 = vmatpush3.msra.mxu0 %v2528_v2  ;;  %v2544_v24 = vld [vmem:[%s4619_s7 + $0xa0] sm:$0xff] }
 0x1e9   :  { %v2936_v27 = vpop.f32.mrf.mxu1  ;;  %v3005_v28 = vpop.f32.mrf.mxu0  ;;  %3236 = vmatprep.subr.mxu1 %v3531_v18  ;;  %3217 = vmatprep.subr.mxu0 %v3531_v18 }
 0x1ea   :  { %3079 = vmatmul.mubr.msk.f32.gmra.mxu1 %vm686_vm4, %v664_v26  ;;  %3154 = vmatmul.mubr.msk.f32.gmra.mxu0 %vm686_vm4, %v664_v26  ;;  %v2543_v28 = vld [vmem:[%s4619_s7 + $0x98] sm:$0xff] }
 0x1eb   :  { %v427_v29 = vpop.f32.mrf.mxu1  ;;  %v627_v30 = vpop.f32.mrf.mxu0  ;;  %3081 = vmatprep.mubr.msk.f32.mxu1 %vm3532_vm2, %v3531_v18  ;;  %3156 = vmatprep.mubr.msk.f32.mxu0 %vm3532_vm2, %v3531_v18 }
 0x1ec   :  { %v665_v31 = vmax.f32 %v427_v29, %v627_v30  ;;  %3218 = vmatpush3.msra.mxu0 %v2527_v3 }
 0x1ed   :  { %v2939_v32 = vpop.f32.mrf.mxu1  ;;  %v3008_v33 = vpop.f32.mrf.mxu0  ;;  %3219 = vmatprep.subr.mxu0 %v3531_v18 }
 0x1ee   :  { %3082 = vmatmul.mubr.msk.f32.gmra.mxu1 %vm686_vm4, %v665_v31  ;;  %3157 = vmatmul.mubr.msk.f32.gmra.mxu0 %vm686_vm4, %v665_v31  ;;  %v2542_v32 = vld [vmem:[%s4619_s7 + $0x90] sm:$0xff] }
 0x1ef   :  { %v432_v34 = vpop.f32.mrf.mxu1  ;;  %v632_v35 = vpop.f32.mrf.mxu0  ;;  %3084 = vmatprep.mubr.msk.f32.mxu1 %vm3532_vm2, %v3531_v18  ;;  %3159 = vmatprep.mubr.msk.f32.mxu0 %vm3532_vm2, %v3531_v18 }
 0x1f0   :  { %v666_v36 = vmax.f32 %v432_v34, %v632_v35  ;;  %3220 = vmatpush3.msra.mxu0 %v2526_v4 }
 0x1f1   :  { %v2942_v37 = vpop.f32.mrf.mxu1  ;;  %v3011_v38 = vpop.f32.mrf.mxu0  ;;  %3267 = vmatprep.subr.mxu0 %v3531_v18 }
 0x1f2   :  { %3085 = vmatmul.mubr.msk.f32.gmra.mxu1 %vm686_vm4, %v666_v36  ;;  %3160 = vmatmul.mubr.msk.f32.gmra.mxu0 %vm686_vm4, %v666_v36  ;;  %v2541_v36 = vld [vmem:[%s4619_s7 + $0x88] sm:$0xff] }
 0x1f3   :  { %v437_v39 = vpop.f32.mrf.mxu1  ;;  %v637_v40 = vpop.f32.mrf.mxu0  ;;  %3087 = vmatprep.mubr.msk.f32.mxu1 %vm3532_vm2, %v3531_v18  ;;  %3162 = vmatprep.mubr.msk.f32.mxu0 %vm3532_vm2, %v3531_v18 }
 0x1f4   :  { %v667_v41 = vmax.f32 %v437_v39, %v637_v40  ;;  %v2540_v40 = vld [vmem:[%s4619_s7 + $0x80] sm:$0xff] }
 0x1f5   :  { %v2945_v42 = vpop.f32.mrf.mxu1  ;;  %v3014_v43 = vpop.f32.mrf.mxu0 }
 0x1f6   :  { %3088 = vmatmul.mubr.msk.f32.gmra.mxu1 %vm686_vm4, %v667_v41  ;;  %3163 = vmatmul.mubr.msk.f32.gmra.mxu0 %vm686_vm4, %v667_v41 }
 0x1f7   :  { %v442_v44 = vpop.f32.mrf.mxu1  ;;  %v642_v45 = vpop.f32.mrf.mxu0  ;;  %3090 = vmatprep.mubr.msk.f32.mxu1 %vm3532_vm2, %v3531_v18  ;;  %3165 = vmatprep.mubr.msk.f32.mxu0 %vm3532_vm2, %v3531_v18 }
 0x1f8   :  { %v668_v46 = vmax.f32 %v442_v44, %v642_v45 }
 0x1f9   :  { %v2948_v47 = vpop.f32.mrf.mxu1  ;;  %v3017_v48 = vpop.f32.mrf.mxu0 }
 0x1fa   :  { %3091 = vmatmul.mubr.msk.f32.gmra.mxu1 %vm686_vm4, %v668_v46  ;;  %3166 = vmatmul.mubr.msk.f32.gmra.mxu0 %vm686_vm4, %v668_v46 }
 0x1fb   :  { %v447_v49 = vpop.f32.mrf.mxu1  ;;  %v647_v50 = vpop.f32.mrf.mxu0  ;;  %3093 = vmatprep.mubr.msk.f32.mxu1 %vm3532_vm2, %v3531_v18  ;;  %3168 = vmatprep.mubr.msk.f32.mxu0 %vm3532_vm2, %v3531_v18 }
 0x1fc   :  { %v669_v51 = vmax.f32 %v447_v49, %v647_v50 }
 0x1fd   :  { %v2951_v52 = vpop.f32.mrf.mxu1  ;;  %v3020_v53 = vpop.f32.mrf.mxu0 }
 0x1fe   :  { %3094 = vmatmul.mubr.msk.f32.gmra.mxu1 %vm686_vm4, %v669_v51  ;;  %3169 = vmatmul.mubr.msk.f32.gmra.mxu0 %vm686_vm4, %v669_v51 }
 0x1ff   :  { %v452_v54 = vpop.f32.mrf.mxu1  ;;  %v652_v55 = vpop.f32.mrf.mxu0  ;;  %3096 = vmatprep.mubr.msk.f32.mxu1 %vm3532_vm2, %v3531_v18  ;;  %3171 = vmatprep.mubr.msk.f32.mxu0 %vm3532_vm2, %v3531_v18 }
 0x200   :  { %v670_v56 = vmax.f32 %v452_v54, %v652_v55 }
 0x201   :  { %v2954_v57 = vpop.f32.mrf.mxu1  ;;  %v3023_v58 = vpop.f32.mrf.mxu0 }
 0x202   :  { %3097 = vmatmul.mubr.msk.f32.gmra.mxu1 %vm686_vm4, %v670_v56  ;;  %3172 = vmatmul.mubr.msk.f32.gmra.mxu0 %vm686_vm4, %v670_v56 }
 0x203   :  { %3190 = vmatprep.mubr.msk.f32.mxu1 %vm3532_vm2, %v3531_v18  ;;  %3221 = vmatprep.mubr.msk.f32.mxu0 %vm3532_vm2, %v3531_v18 }
 0x28a   :  { %v798_v5 = vpop.f32.mrf.mxu1  ;;  %v953_v6 = vpop.f32.mrf.mxu0 }
 0x28b   :  { %v1027_v7 = vmax.f32 %v798_v5, %v953_v6 }
 0x28c   :  { %v3056_v8 = vpop.f32.mrf.mxu1  ;;  %v3131_v9 = vpop.f32.mrf.mxu0 }
 0x28d   :  { %v1042_v10 = vmax.f32 %v1027_v7, 0.0 }
 0x28e   :  { %v803_v12 = vpop.f32.mrf.mxu1  ;;  %v958_v13 = vpop.f32.mrf.mxu0 }
 0x28f   :  { %v1028_v14 = vmax.f32 %v803_v12, %v958_v13  ;;  %3191 = vmatmul.mubr.msk.f32.vlgmr.msra.gmra.mxu1 %vm1066_vm6, %v1042_v10 }
 0x290   :  { %v3059_v16 = vpop.f32.mrf.mxu1  ;;  %v3134_v17 = vpop.f32.mrf.mxu0  ;;  %3193 = vmatprep.mubr.msk.f32.mxu1 %vm3532_vm2, %v3531_v18  ;;  %3237 = vmatpush3.msk.msra.mxu1 %vm1082_vm5, %v2547_v11 }
 0x291   :  { %v1043_v19 = vmax.f32 %v1028_v14, 0.0  ;;  %3238 = vmatprep.subr.mxu1 %v3531_v18 }
 0x292   :  { %v808_v21 = vpop.f32.mrf.mxu1  ;;  %v963_v22 = vpop.f32.mrf.mxu0  ;;  %3239 = vmatpush3.msra.mxu1 %v2546_v15 }
 0x293   :  { %v1029_v23 = vmax.f32 %v808_v21, %v963_v22  ;;  %3194 = vmatmul.mubr.msk.f32.gmra.mxu1 %vm1066_vm6, %v1043_v19  ;;  %3240 = vmatprep.subr.mxu1 %v3531_v18 }
 0x294   :  { %v3062_v25 = vpop.f32.mrf.mxu1  ;;  %v3137_v26 = vpop.f32.mrf.mxu0  ;;  %3196 = vmatprep.mubr.msk.f32.mxu1 %vm3532_vm2, %v3531_v18  ;;  %3241 = vmatpush3.msra.mxu1 %v2545_v20 }
 0x295   :  { %v1044_v27 = vmax.f32 %v1029_v23, 0.0  ;;  %3242 = vmatprep.subr.mxu1 %v3531_v18 }
 0x296   :  { %v813_v29 = vpop.f32.mrf.mxu1  ;;  %v968_v30 = vpop.f32.mrf.mxu0  ;;  %3243 = vmatpush3.msra.mxu1 %v2544_v24 }
 0x297   :  { %v1030_v31 = vmax.f32 %v813_v29, %v968_v30  ;;  %3197 = vmatmul.mubr.msk.f32.gmra.mxu1 %vm1066_vm6, %v1044_v27  ;;  %3244 = vmatprep.subr.mxu1 %v3531_v18 }
 0x298   :  { %v3065_v33 = vpop.f32.mrf.mxu1  ;;  %v3140_v34 = vpop.f32.mrf.mxu0  ;;  %3199 = vmatprep.mubr.msk.f32.mxu1 %vm3532_vm2, %v3531_v18  ;;  %3245 = vmatpush3.msra.mxu1 %v2543_v28 }
 0x299   :  { %v1045_v35 = vmax.f32 %v1030_v31, 0.0  ;;  %3246 = vmatprep.subr.mxu1 %v3531_v18 }
 0x29a   :  { %v818_v37 = vpop.f32.mrf.mxu1  ;;  %v973_v38 = vpop.f32.mrf.mxu0  ;;  %3247 = vmatpush3.msra.mxu1 %v2542_v32 }
 0x29b   :  { %v1031_v39 = vmax.f32 %v818_v37, %v973_v38  ;;  %3200 = vmatmul.mubr.msk.f32.gmra.mxu1 %vm1066_vm6, %v1045_v35  ;;  %3248 = vmatprep.subr.mxu1 %v3531_v18 }
 0x29c   :  { %v3068_v41 = vpop.f32.mrf.mxu1  ;;  %v3143_v42 = vpop.f32.mrf.mxu0  ;;  %3202 = vmatprep.mubr.msk.f32.mxu1 %vm3532_vm2, %v3531_v18  ;;  %3249 = vmatpush3.msra.mxu1 %v2541_v36 }
 0x29d   :  { %v1046_v43 = vmax.f32 %v1031_v39, 0.0  ;;  %3250 = vmatprep.subr.mxu1 %v3531_v18 }
 0x29e   :  { %v823_v44 = vpop.f32.mrf.mxu1  ;;  %v978_v45 = vpop.f32.mrf.mxu0  ;;  %3251 = vmatpush3.msra.mxu1 %v2540_v40 }
 0x29f   :  { %v1032_v46 = vmax.f32 %v823_v44, %v978_v45  ;;  %3203 = vmatmul.mubr.msk.f32.gmra.mxu1 %vm1066_vm6, %v1046_v43  ;;  %3286 = vmatprep.subr.mxu1 %v3531_v18 }
 0x2a0   :  { %v3071_v47 = vpop.f32.mrf.mxu1  ;;  %v3146_v48 = vpop.f32.mrf.mxu0  ;;  %3252 = vmatprep.mubr.msk.f32.mxu1 %vm3532_vm2, %v3531_v18 }
 0x2a1   :  { %v1047_v49 = vmax.f32 %v1032_v46, 0.0 }
 0x2a2   :  { %v828_v50 = vpop.f32.mrf.mxu1  ;;  %v983_v51 = vpop.f32.mrf.mxu0 }
 0x2a3   :  { %v1033_v52 = vmax.f32 %v828_v50, %v983_v51  ;;  %3222 = vmatmul.mubr.msk.f32.vlgmr.msra.gmra.mxu0 %vm1066_vm6, %v1047_v49 }
 0x2a4   :  { %v3074_v53 = vpop.f32.mrf.mxu1  ;;  %v3149_v54 = vpop.f32.mrf.mxu0  ;;  %3224 = vmatprep.mubr.msk.f32.mxu0 %vm3532_vm2, %v3531_v18 }
 0x2a5   :  { %v1048_v55 = vmax.f32 %v1033_v52, 0.0 }
 0x2a6   :  { %v833_v56 = vpop.f32.mrf.mxu1  ;;  %v988_v57 = vpop.f32.mrf.mxu0 }
 0x2a7   :  { %v1034_v58 = vmax.f32 %v833_v56, %v988_v57  ;;  %3225 = vmatmul.mubr.msk.f32.gmra.mxu0 %vm1066_vm6, %v1048_v55 }
 0x2a8   :  { %v3077_v59 = vpop.f32.mrf.mxu1  ;;  %v3152_v60 = vpop.f32.mrf.mxu0  ;;  %3227 = vmatprep.mubr.msk.f32.mxu0 %vm3532_vm2, %v3531_v18 }
 0x2a9   :  { %v1049_v61 = vmax.f32 %v1034_v58, 0.0 }
 0x2aa   :  { %v838_v62 = vpop.f32.mrf.mxu1  ;;  %v993_v63 = vpop.f32.mrf.mxu0 }
 0x2ab   :  { %v1035_v0 = vmax.f32 %v838_v62, %v993_v63  ;;  %3228 = vmatmul.mubr.msk.f32.gmra.mxu0 %vm1066_vm6, %v1049_v61 }
 0x2ac   :  { %v3080_v1 = vpop.f32.mrf.mxu1  ;;  %v3155_v2 = vpop.f32.mrf.mxu0  ;;  %3230 = vmatprep.mubr.msk.f32.mxu0 %vm3532_vm2, %v3531_v18 }
 0x2ad   :  { %v1050_v3 = vmax.f32 %v1035_v0, 0.0 }
 0x2ae   :  { %v843_v4 = vpop.f32.mrf.mxu1  ;;  %v998_v5 = vpop.f32.mrf.mxu0 }
 0x2af   :  { %v1036_v6 = vmax.f32 %v843_v4, %v998_v5  ;;  %3231 = vmatmul.mubr.msk.f32.gmra.mxu0 %vm1066_vm6, %v1050_v3  ;;  %v2525_v3 = vld [vmem:[%s4620_s8] ss:$0 sm:$0xff] }
 0x2b0   :  { %v3083_v7 = vpop.f32.mrf.mxu1  ;;  %v3158_v8 = vpop.f32.mrf.mxu0  ;;  %3233 = vmatprep.mubr.msk.f32.mxu0 %vm3532_vm2, %v3531_v18 }
 0x2b1   :  { %v1051_v9 = vmax.f32 %v1036_v6, 0.0 }
 0x2b2   :  { %v848_v10 = vpop.f32.mrf.mxu1  ;;  %v1003_v11 = vpop.f32.mrf.mxu0 }
 0x2b3   :  { %v1037_v12 = vmax.f32 %v848_v10, %v1003_v11  ;;  %3234 = vmatmul.mubr.msk.f32.gmra.mxu0 %vm1066_vm6, %v1051_v9 }
 0x2b4   :  { %v3086_v13 = vpop.f32.mrf.mxu1  ;;  %v3161_v14 = vpop.f32.mrf.mxu0  ;;  %3277 = vmatprep.mubr.msk.f32.mxu0 %vm3532_vm2, %v3531_v18 }
 0x2b5   :  { %v1052_v15 = vmax.f32 %v1037_v12, 0.0 }
 0x2b6   :  { %v853_v16 = vpop.f32.mrf.mxu1  ;;  %v1008_v17 = vpop.f32.mrf.mxu0 }
 0x2b7   :  { %v1038_v19 = vmax.f32 %v853_v16, %v1008_v17  ;;  %3253 = vmatmul.mubr.msk.f32.vlgmr.msra.gmra.mxu1 %vm1066_vm6, %v1052_v15 }
 0x2b8   :  { %v3089_v20 = vpop.f32.mrf.mxu1  ;;  %v3164_v21 = vpop.f32.mrf.mxu0  ;;  %3255 = vmatprep.mubr.msk.f32.mxu1 %vm3532_vm2, %v3531_v18 }
 0x2b9   :  { %v1053_v22 = vmax.f32 %v1038_v19, 0.0 }
 0x2ba   :  { %v858_v23 = vpop.f32.mrf.mxu1  ;;  %v1013_v24 = vpop.f32.mrf.mxu0 }
 0x2bb   :  { %v1039_v25 = vmax.f32 %v858_v23, %v1013_v24  ;;  %3256 = vmatmul.mubr.msk.f32.gmra.mxu1 %vm1066_vm6, %v1053_v22  ;;  %v1431_v24 = vld [vmem:[%s4621_s9] sm:$0xff] }
 0x2bc   :  { %v3092_v26 = vpop.f32.mrf.mxu1  ;;  %v3167_v27 = vpop.f32.mrf.mxu0  ;;  %3258 = vmatprep.mubr.msk.f32.mxu1 %vm3532_vm2, %v3531_v18 }
 0x2bd   :  { %v1054_v28 = vmax.f32 %v1039_v25, 0.0  ;;  %v1524_v25 = vld [vmem:[%s4622_s10] sm:$0xff]  ;;  %v1628_v26 = vld [vmem:[%s4623_s11 + $0x48] sm:$0xff] }
 0x2be   :  { %v863_v29 = vpop.f32.mrf.mxu1  ;;  %v1018_v30 = vpop.f32.mrf.mxu0  ;;  %v1728_v27 = vld [vmem:[%s4624_s12 + $0x48] sm:$0xff] }
 0x2bf   :  { %v1040_v31 = vmax.f32 %v863_v29, %v1018_v30  ;;  %3259 = vmatmul.mubr.msk.f32.gmra.mxu1 %vm1066_vm6, %v1054_v28  ;;  %v1432_v28 = vld [vmem:[%s4621_s9 + $0x8] sm:$0xff]  ;;  %v1627_v30 = vld [vmem:[%s4623_s11 + $0x40] sm:$0xff] }
 0x2c0   :  { %v3095_v32 = vpop.f32.mrf.mxu1  ;;  %v3170_v33 = vpop.f32.mrf.mxu0  ;;  %3261 = vmatprep.mubr.msk.f32.mxu1 %vm3532_vm2, %v3531_v18  ;;  %v1525_v29 = vld [vmem:[%s4622_s10 + $0x8] sm:$0xff] }
 0x2c1   :  { %v1055_v34 = vmax.f32 %v1040_v31, 0.0  ;;  %v1727_v31 = vld [vmem:[%s4624_s12 + $0x40] sm:$0xff]  ;;  %v1433_v32 = vld [vmem:[%s4621_s9 + $0x10] sm:$0xf] }
 0x2c2   :  { %v868_v35 = vpop.f32.mrf.mxu1  ;;  %v1023_v36 = vpop.f32.mrf.mxu0  ;;  %v1526_v33 = vld [vmem:[%s4622_s10 + $0x10] sm:$0xf] }
 0x2c3   :  { %v1041_v37 = vmax.f32 %v868_v35, %v1023_v36  ;;  %3262 = vmatmul.mubr.msk.f32.gmra.mxu1 %vm1066_vm6, %v1055_v34  ;;  %v1626_v34 = vld [vmem:[%s4623_s11 + $0x38] sm:$0xff]  ;;  %v1625_v36 = vld [vmem:[%s4623_s11 + $0x30] sm:$0xff] }
 0x2c4   :  { %v3098_v38 = vpop.f32.mrf.mxu1  ;;  %v3173_v39 = vpop.f32.mrf.mxu0  ;;  %3264 = vmatprep.mubr.msk.f32.mxu1 %vm3532_vm2, %v3531_v18  ;;  %v1726_v35 = vld [vmem:[%s4624_s12 + $0x38] sm:$0xff] }
 0x2c5   :  { %v1056_v40 = vmax.f32 %v1041_v37, 0.0  ;;  %v1725_v37 = vld [vmem:[%s4624_s12 + $0x30] sm:$0xff]  ;;  %v1624_v38 = vld [vmem:[%s4623_s11 + $0x28] sm:$0xff] }
 0x2c6   :  { %v1724_v39 = vld [vmem:[%s4624_s12 + $0x28] sm:$0xff] }
 0x2c7   :  { %3265 = vmatmul.mubr.msk.f32.gmra.mxu1 %vm1066_vm6, %v1056_v40  ;;  %v1623_v40 = vld [vmem:[%s4623_s11 + $0x20] sm:$0xff] }
 0x2c8   :  { %3296 = vmatprep.mubr.msk.f32.mxu1 %vm3532_vm2, %v3531_v18 }
 0x34f   :  { %v1152_v41 = vpop.f32.mrf.mxu1 }
 0x350   :  { %v1182_v17 = vadd.f32 %v2525_v3, %v1152_v41  ;;  %v1723_v41 = vld [vmem:[%s4624_s12 + $0x20] sm:$0xff] }
 0x351   :  { %v3192_v42 = vpop.f32.mrf.mxu1 }
 0x352   :  { %v1622_v42 = vld [vmem:[%s4623_s11 + $0x18] sm:$0xff] }
 0x353   :  { %v1157_v43 = vpop.f32.mrf.mxu1 }
 0x354   :  { %v1183_v14 = vadd.f32 %v2525_v3, %v1157_v43  ;;  %v1722_v43 = vld [vmem:[%s4624_s12 + $0x18] sm:$0xff] }
 0x355   :  { %v3195_v44 = vpop.f32.mrf.mxu1 }
 0x356   :  { %v1621_v44 = vld [vmem:[%s4623_s11 + $0x10] sm:$0xff] }
 0x357   :  { %v1162_v45 = vpop.f32.mrf.mxu1 }
 0x358   :  { %v1184_v10 = vadd.f32 %v2525_v3, %v1162_v45  ;;  %v1721_v45 = vld [vmem:[%s4624_s12 + $0x10] sm:$0xff] }
 0x359   :  { %v3198_v46 = vpop.f32.mrf.mxu1 }
 0x35a   :  { %v1620_v46 = vld [vmem:[%s4623_s11 + $0x8] sm:$0xff] }
 0x35b   :  { %v1167_v47 = vpop.f32.mrf.mxu1 }
 0x35c   :  { %v1185_v7 = vadd.f32 %v2525_v3, %v1167_v47  ;;  %v1720_v47 = vld [vmem:[%s4624_s12 + $0x8] sm:$0xff] }
 0x35d   :  { %v3201_v48 = vpop.f32.mrf.mxu1 }
 0x35e   :  { %v1619_v48 = vld [vmem:[%s4623_s11] sm:$0xff] }
 0x35f   :  { %v1172_v49 = vpop.f32.mrf.mxu1 }
 0x360   :  { %v1186_v5 = vadd.f32 %v2525_v3, %v1172_v49  ;;  %v1719_v49 = vld [vmem:[%s4624_s12] sm:$0xff] }
 0x361   :  { %v3204_v50 = vpop.f32.mrf.mxu1 }
 0x363   :  { %v1280_v51 = vpop.f32.mrf.mxu0 }
 0x364   :  { %v1304_v21 = vadd.f32 %v1280_v51, %v1182_v17  ;;  %v2578_v17 = vld [vmem:[%s4625_s13 + $0x70] sm:$0xff] }
 0x365   :  { %v3223_v52 = vpop.f32.mrf.mxu0 }
 0x367   :  { %v1285_v53 = vpop.f32.mrf.mxu0 }
 0x368   :  { %v1305_v19 = vadd.f32 %v1285_v53, %v1183_v14 }
 0x369   :  { %v3226_v54 = vpop.f32.mrf.mxu0 }
 0x36b   :  { %v1290_v55 = vpop.f32.mrf.mxu0 }
 0x36c   :  { %v1306_v15 = vadd.f32 %v1290_v55, %v1184_v10  ;;  %v1820_v55 = vld [vmem:[%s4625_s13 + $0x20] sm:$0xff]  ;;  %v2568_v10 = vld [vmem:[%s4625_s13 + $0x28] sm:$0xff] }
 0x36d   :  { %v3229_v56 = vpop.f32.mrf.mxu0 }
 0x36f   :  { %v1295_v57 = vpop.f32.mrf.mxu0 }
 0x370   :  { %v1307_v11 = vadd.f32 %v1295_v57, %v1185_v7  ;;  %v2570_v7 = vld [vmem:[%s4625_s13 + $0x38] sm:$0xff] }
 0x371   :  { %v3232_v58 = vpop.f32.mrf.mxu0 }
 0x373   :  { %v1300_v59 = vpop.f32.mrf.mxu0 }
 0x374   :  { %v1308_v8 = vadd.f32 %v1300_v59, %v1186_v5  ;;  %v2571_v5 = vld [vmem:[%s4625_s13 + $0x40] sm:$0xff] }
 0x375   :  { %v3235_v60 = vpop.f32.mrf.mxu0 }
 0x377   :  { %v1402_v61 = vpop.f32.mrf.mxu1 }
 0x378   :  { %v1426_v23 = vadd.f32 %v1402_v61, %v1304_v21  ;;  %v1819_v61 = vld [vmem:[%s4625_s13 + $0x18] sm:$0xff] }
 0x379   :  { %v3254_v62 = vpop.f32.mrf.mxu1 }
 0x37b   :  { %v1407_v63 = vpop.f32.mrf.mxu1 }
 0x37c   :  { %v1427_v22 = vadd.f32 %v1407_v63, %v1305_v19 }
 0x37d   :  { %v3257_v0 = vpop.f32.mrf.mxu1 }
 0x37f   :  { %v1412_v1 = vpop.f32.mrf.mxu1 }
 0x380   :  { %v1428_v20 = vadd.f32 %v1412_v1, %v1306_v15  ;;  %v1818_v1 = vld [vmem:[%s4625_s13 + $0x10] sm:$0xff] }
 0x381   :  { %v3260_v2 = vpop.f32.mrf.mxu1 }
 0x383   :  { %v1417_v4 = vpop.f32.mrf.mxu1 }
 0x384   :  { %v1429_v16 = vadd.f32 %v1417_v4, %v1307_v11  ;;  %v2572_v4 = vld [vmem:[%s4625_s13 + $0x48] sm:$0xff] }
 0x385   :  { %v3263_v6 = vpop.f32.mrf.mxu1 }
 0x386   :  { %v1817_v6 = vld [vmem:[%s4625_s13 + $0x8] sm:$0xff] }
 0x387   :  { %v1422_v9 = vpop.f32.mrf.mxu1 }
 0x388   :  { %v1430_v12 = vadd.f32 %v1422_v9, %v1308_v8  ;;  %v1816_v8 = vld [vmem:[%s4625_s13] sm:$0xff]  ;;  %v2569_v9 = vld [vmem:[%s4625_s13 + $0x30] sm:$0xff] }
 0x389   :  { %v3266_v13 = vpop.f32.mrf.mxu1 }
 0x38a   :  { %3268 = vmatpush3.msra.mxu0 %v1430_v12  ;;  %3287 = vmatpush3.msra.mxu1 %v1430_v12 }
 0x38b   :  { %3269 = vmatprep.subr.mxu0 %v3531_v18  ;;  %3288 = vmatprep.subr.mxu1 %v3531_v18 }
 0x38c   :  { %3270 = vmatpush3.msra.mxu0 %v1429_v16  ;;  %3289 = vmatpush3.msra.mxu1 %v1429_v16 }
 0x38d   :  { %3271 = vmatprep.subr.mxu0 %v3531_v18  ;;  %3290 = vmatprep.subr.mxu1 %v3531_v18 }
 0x38e   :  { %3272 = vmatpush3.msra.mxu0 %v1428_v20  ;;  %3291 = vmatpush3.msra.mxu1 %v1428_v20 }
 0x38f   :  { %3273 = vmatprep.subr.mxu0 %v3531_v18  ;;  %3292 = vmatprep.subr.mxu1 %v3531_v18 }
 0x390   :  { %3274 = vmatpush3.msra.mxu0 %v1427_v22  ;;  %3293 = vmatpush3.msra.mxu1 %v1427_v22  ;;  %v2577_v22 = vld [vmem:[%s4625_s13 + $0x68] sm:$0xff] }
 0x391   :  { %3275 = vmatprep.subr.mxu0 %v3531_v18  ;;  %3294 = vmatprep.subr.mxu1 %v3531_v18 }
 0x392   :  { %3276 = vmatpush3.msra.mxu0 %v1426_v23  ;;  %3295 = vmatpush3.msra.mxu1 %v1426_v23  ;;  %v2584_v23 = vld [vmem:[%s4625_s13 + $0x98] sm:$0xff] }
 0x393   :  { %3278 = vmatmul.mubr.msk.f32.vlgmr.msra.gmra.mxu0 %vm1434_vm7, %v1431_v24  ;;  %3297 = vmatmul.mubr.msk.f32.vlgmr.msra.gmra.mxu1 %vm1434_vm7, %v1524_v25 }
 0x394   :  { %3280 = vmatprep.mubr.msk.f32.mxu0 %vm3532_vm2, %v3531_v18  ;;  %3299 = vmatprep.mubr.msk.f32.mxu1 %vm3532_vm2, %v3531_v18 }
 0x395   :  { %3305 = vmatprep.subr.mxu0 %v3531_v18  ;;  %3334 = vmatprep.subr.mxu1 %v3531_v18 }
 0x396   :  { %3306 = vmatpush3.msra.mxu0 %v1628_v26  ;;  %3335 = vmatpush3.msra.mxu1 %v1728_v27  ;;  %v2576_v26 = vld [vmem:[%s4625_s13 + $0x60] sm:$0xff] }
 0x397   :  { %3281 = vmatmul.mubr.msk.f32.gmra.mxu0 %vm1434_vm7, %v1432_v28  ;;  %3300 = vmatmul.mubr.msk.f32.gmra.mxu1 %vm1434_vm7, %v1525_v29  ;;  %v2583_v28 = vld [vmem:[%s4625_s13 + $0x90] sm:$0xff] }
 0x398   :  { %3283 = vmatprep.mubr.msk.f32.mxu0 %vm3532_vm2, %v3531_v18  ;;  %3302 = vmatprep.mubr.msk.f32.mxu1 %vm3532_vm2, %v3531_v18 }
 0x399   :  { %3307 = vmatprep.subr.mxu0 %v3531_v18  ;;  %3336 = vmatprep.subr.mxu1 %v3531_v18 }
 0x39a   :  { %3308 = vmatpush3.msra.mxu0 %v1627_v30  ;;  %3337 = vmatpush3.msra.mxu1 %v1727_v31  ;;  %v2575_v31 = vld [vmem:[%s4625_s13 + $0x58] sm:$0xff] }
 0x39b   :  { %3284 = vmatmul.mubr.msk.f32.gmra.mxu0 %vm1434_vm7, %v1433_v32  ;;  %3303 = vmatmul.mubr.msk.f32.gmra.mxu1 %vm1434_vm7, %v1526_v33  ;;  %v2582_v32 = vld [vmem:[%s4625_s13 + $0x88] sm:$0xff] }
 0x39c   :  { %3309 = vmatprep.subr.mxu0 %v3531_v18  ;;  %3338 = vmatprep.subr.mxu1 %v3531_v18 }
 0x39d   :  { %3310 = vmatpush3.msra.mxu0 %v1626_v34  ;;  %3339 = vmatpush3.msra.mxu1 %v1726_v35 }
 0x39e   :  { %3311 = vmatprep.subr.mxu0 %v3531_v18  ;;  %3340 = vmatprep.subr.mxu1 %v3531_v18 }
 0x39f   :  { %3312 = vmatpush3.msra.mxu0 %v1625_v36  ;;  %3341 = vmatpush3.msra.mxu1 %v1725_v37  ;;  %v2574_v36 = vld [vmem:[%s4625_s13 + $0x50] sm:$0xff]  ;;  %v2581_v37 = vld [vmem:[%s4625_s13 + $0x80] sm:$0xff] }
 0x3a0   :  { %3313 = vmatprep.subr.mxu0 %v3531_v18  ;;  %3342 = vmatprep.subr.mxu1 %v3531_v18 }
 0x3a1   :  { %3314 = vmatpush3.msra.mxu0 %v1624_v38  ;;  %3343 = vmatpush3.msra.mxu1 %v1724_v39  ;;  %v2590_v38 = vld [vmem:[%s4625_s13 + $0xc0] sm:$0xff]  ;;  %v2580_v39 = vld [vmem:[%s4625_s13 + $0x78] sm:$0xff] }
 0x3a2   :  { %3315 = vmatprep.subr.mxu0 %v3531_v18  ;;  %3344 = vmatprep.subr.mxu1 %v3531_v18 }
 0x3a3   :  { %3316 = vmatpush3.msra.mxu0 %v1623_v40  ;;  %3345 = vmatpush3.msra.mxu1 %v1723_v41  ;;  %v2589_v41 = vld [vmem:[%s4625_s13 + $0xb8] sm:$0xff] }
 0x3a4   :  { %3317 = vmatprep.subr.mxu0 %v3531_v18  ;;  %3346 = vmatprep.subr.mxu1 %v3531_v18 }
 0x3a5   :  { %3318 = vmatpush3.msra.mxu0 %v1622_v42  ;;  %3347 = vmatpush3.msra.mxu1 %v1722_v43  ;;  %v2588_v43 = vld [vmem:[%s4625_s13 + $0xb0] sm:$0xff] }
 0x3a6   :  { %3319 = vmatprep.subr.mxu0 %v3531_v18  ;;  %3348 = vmatprep.subr.mxu1 %v3531_v18 }
 0x3a7   :  { %3320 = vmatpush3.msra.mxu0 %v1621_v44  ;;  %3349 = vmatpush3.msra.mxu1 %v1721_v45  ;;  %v2587_v44 = vld [vmem:[%s4625_s13 + $0xa8] sm:$0xff] }
 0x3a8   :  { %3321 = vmatprep.subr.mxu0 %v3531_v18  ;;  %3350 = vmatprep.subr.mxu1 %v3531_v18 }
 0x3a9   :  { %3325 = vmatprep.mubr.msk.f32.mxu0 %vm3532_vm2, %v3531_v18  ;;  %3354 = vmatprep.mubr.msk.f32.mxu1 %vm3532_vm2, %v3531_v18 }
 0x3aa   :  { %3322 = vmatpush3.msra.mxu0 %v1620_v46  ;;  %3351 = vmatpush3.msra.mxu1 %v1720_v47  ;;  %v2586_v46 = vld [vmem:[%s4625_s13 + $0xa0] sm:$0xff]  ;;  %v2233_v47 = vld [vmem:[%s4627_s15 + $0x30] sm:$0x3] }
 0x3ab   :  { %3323 = vmatprep.subr.mxu0 %v3531_v18  ;;  %3352 = vmatprep.subr.mxu1 %v3531_v18 }
 0x3ac   :  { %3324 = vmatpush3.msra.mxu0 %v1619_v48  ;;  %3353 = vmatpush3.msra.mxu1 %v1719_v49  ;;  %v2232_v48 = vld [vmem:[%s4627_s15 + $0x28] sm:$0xff]  ;;  %v2324_v49 = vld [vmem:[%s4628_s16 + $0x30] sm:$0x3] }
 0x3ad   :  { %3363 = vmatprep.subr.mxu0 %v3531_v18  ;;  %3376 = vmatprep.subr.mxu1 %v3531_v18 }
 0x453   :  { %v1510_v50 = vpop.f32.mrf.mxu0  ;;  %v1602_v51 = vpop.f32.mrf.mxu1 }
 0x454   :  { %v1616_v52 = vmax.f32 %v1510_v50, %v1602_v51  ;;  %v2231_v50 = vld [vmem:[%s4627_s15 + $0x20] sm:$0xff]  ;;  %v2323_v51 = vld [vmem:[%s4628_s16 + $0x28] sm:$0xff] }
 0x455   :  { %v3279_v53 = vpop.f32.mrf.mxu0  ;;  %v3298_v54 = vpop.f32.mrf.mxu1 }
 0x456   :  { %3326 = vmatmul.mubr.msk.f32.vlgmr.msra.gmra.mxu0 %vm1629_vm8, %v1616_v52  ;;  %3355 = vmatmul.mubr.msk.f32.vlgmr.msra.gmra.mxu1 %vm1629_vm8, %v1616_v52  ;;  %v2230_v52 = vld [vmem:[%s4627_s15 + $0x18] sm:$0xff]  ;;  %v2322_v53 = vld [vmem:[%s4628_s16 + $0x20] sm:$0xff]  ;;  %v2229_v54 = vld [vmem:[%s4627_s15 + $0x10] sm:$0xff] }
 0x457   :  { %v1515_v56 = vpop.f32.mrf.mxu0  ;;  %v1607_v57 = vpop.f32.mrf.mxu1  ;;  %3328 = vmatprep.mubr.msk.f32.mxu0 %vm3532_vm2, %v3531_v18  ;;  %3357 = vmatprep.mubr.msk.f32.mxu1 %vm3532_vm2, %v3531_v18 }
 0x458   :  { %v1617_v58 = vmax.f32 %v1515_v56, %v1607_v57  ;;  %3364 = vmatpush3.msra.mxu0 %v1820_v55  ;;  %3377 = vmatpush3.msra.mxu1 %v2572_v4  ;;  %v2321_v55 = vld [vmem:[%s4628_s16 + $0x18] sm:$0xff]  ;;  %v2228_v56 = vld [vmem:[%s4627_s15 + $0x8] sm:$0xff]  ;;  %v2320_v57 = vld [vmem:[%s4628_s16 + $0x10] sm:$0xff] }
 0x459   :  { %v3282_v59 = vpop.f32.mrf.mxu0  ;;  %v3301_v60 = vpop.f32.mrf.mxu1  ;;  %3365 = vmatprep.subr.mxu0 %v3531_v18  ;;  %3378 = vmatprep.subr.mxu1 %v3531_v18 }
 0x45a   :  { %3329 = vmatmul.mubr.msk.f32.gmra.mxu0 %vm1629_vm8, %v1617_v58  ;;  %3358 = vmatmul.mubr.msk.f32.gmra.mxu1 %vm1629_vm8, %v1617_v58  ;;  %v2227_v58 = vld [vmem:[%s4627_s15] sm:$0xff]  ;;  %v2319_v59 = vld [vmem:[%s4628_s16 + $0x8] sm:$0xff] }
 0x45b   :  { %v1520_v62 = vpop.f32.mrf.mxu0  ;;  %v1612_v63 = vpop.f32.mrf.mxu1  ;;  %3331 = vmatprep.mubr.msk.f32.mxu0 %vm3532_vm2, %v3531_v18  ;;  %3360 = vmatprep.mubr.msk.f32.mxu1 %vm3532_vm2, %v3531_v18  ;;  %v2318_v60 = vld [vmem:[%s4628_s16] sm:$0xff]  ;;  %s3534_s16 = smov [#allocation2]  }
 0x45c   :  { %v1618_v0 = vmax.f32 %v1520_v62, %v1612_v63  ;;  %3366 = vmatpush3.msra.mxu0 %v1819_v61  ;;  %3379 = vmatpush3.msra.mxu1 %v2571_v5  ;;  %s2410_s7 = sshll.u32 %s3534_s16, 4  ;;  %s2411_s7 = int_to_ptr.vmem [resolvable:$true] %s2410_s7 }
 0x45d   :  { %v3285_v2 = vpop.f32.mrf.mxu0  ;;  %v3304_v3 = vpop.f32.mrf.mxu1  ;;  %3367 = vmatprep.subr.mxu0 %v3531_v18  ;;  %3380 = vmatprep.subr.mxu1 %v3531_v18 }
 0x45e   :  { %3332 = vmatmul.mubr.msk.f32.gmra.mxu0 %vm1629_vm8, %v1618_v0  ;;  %3361 = vmatmul.mubr.msk.f32.gmra.mxu1 %vm1629_vm8, %v1618_v0 }
 0x45f   :  { %3368 = vmatpush3.msra.mxu0 %v1818_v1  ;;  %3373 = vmatprep.mubr.msk.f32.mxu0 %vm3532_vm2, %v3531_v18  ;;  %v2567_v1 = vld [vmem:[%s4626_s14] ss:$0 sm:$0xff]  ;;  %s3533_s14 = smov [#allocation4]  }
 0x460   :  { %3369 = vmatprep.subr.mxu0 %v3531_v18  ;;  %3386 = vmatprep.mubr.msk.f32.mxu1 %vm3532_vm2, %v3531_v18  ;;  %s2420_s15 = sshll.u32 %s3533_s14, 4  ;;  %s2421_s15 = int_to_ptr.vmem [resolvable:$true] %s2420_s15 }
 0x461   :  { %3370 = vmatpush3.msra.mxu0 %v1817_v6  ;;  %3381 = vmatpush3.msra.mxu1 %v2570_v7  ;;  %s3467_s4 = scalar_lea.vmem %s2421_s15, 32  ;;  %p3472_p1 = scmp.lt.s32.totalorder %s2421_s15, %s2421_s15 }
 0x462   :  { %3371 = vmatprep.subr.mxu0 %v3531_v18  ;;  %3382 = vmatprep.subr.mxu1 %v3531_v18  ;;  %p3468_p0 = scmp.ne.s32.totalorder %s2421_s15, %s3467_s4  ;;  %p3473_p2 = scmp.lt.s32.totalorder %s3467_s4, %s3467_s4 }
 0x463   :  { %3372 = vmatpush3.msra.mxu0 %v1816_v8  ;;  %3383 = vmatpush3.msra.mxu1 %v2569_v9 }
 0x464   :  { %3389 = vmatprep.subr.mxu0 %v3531_v18  ;;  %3384 = vmatprep.subr.mxu1 %v3531_v18  ;;  %p3474_p3 = por %p3473_p2, %p3472_p1 }
 0x465   :  { %3385 = vmatpush3.msra.mxu1 %v2568_v10 }
 0x466   :  { %3402 = vmatprep.subr.mxu1 %v3531_v18  ;;  %p3475_p4 = pnand %p3474_p3, %p3468_p0 }
 0x516   :  { %v1705_v11 = vpop.f32.mrf.mxu0  ;;  %v1795_v12 = vpop.f32.mrf.mxu1 }
 0x517   :  { %v1809_v13 = vmax.f32 %v1705_v11, %v1795_v12 }
 0x518   :  { %v3327_v14 = vpop.f32.mrf.mxu0  ;;  %v3356_v15 = vpop.f32.mrf.mxu1 }
 0x519   :  { %v1812_v16 = vmax.f32 %v1809_v13, 0.0 }
 0x51a   :  { %v1710_v19 = vpop.f32.mrf.mxu0  ;;  %v1800_v20 = vpop.f32.mrf.mxu1 }
 0x51b   :  { %v1907_v21 = vrot.slane %v1812_v16, 4  ;;  %3374 = vmatmul.mubr.msk.f32.vlgmr.msra.gmra.mxu0 %vm1434_vm7, %v1812_v16  ;;  %v1810_v27 = vmax.f32 %v1710_v19, %v1800_v20 }
 0x51c   :  { %3390 = vmatpush3.msra.mxu0 %v2578_v17  ;;  %3399 = vmatprep.mubr.msk.f32.mxu0 %vm3532_vm2, %v3531_v18  ;;  %v3330_v24 = vpop.f32.mrf.mxu0  ;;  %v3359_v25 = vpop.f32.mrf.mxu1 }
 0x51d   :  { %3391 = vmatprep.subr.mxu0 %v3531_v18  ;;  %3387 = vmatmul.mubr.msk.f32.vlgmr.msra.gmra.mxu1 %vm1434_vm7, %v1907_v21  ;;  %v1813_v35 = vmax.f32 %v1810_v27, 0.0 }
 0x51e   :  { %3392 = vmatpush3.msra.mxu0 %v2577_v22  ;;  %3403 = vmatpush3.msra.mxu1 %v2584_v23  ;;  %v1715_v29 = vpop.f32.mrf.mxu0  ;;  %v1805_v30 = vpop.f32.mrf.mxu1 }
 0x51f   :  { %3393 = vmatprep.subr.mxu0 %v3531_v18  ;;  %3404 = vmatprep.subr.mxu1 %v3531_v18  ;;  %v2067_v40 = vrot.slane %v1813_v35, 4  ;;  %v1811_v42 = vmax.f32 %v1715_v29, %v1805_v30 }
 0x520   :  { %3394 = vmatpush3.msra.mxu0 %v2576_v26  ;;  %3405 = vmatpush3.msra.mxu1 %v2583_v28  ;;  %v3333_v33 = vpop.f32.mrf.mxu0  ;;  %v3362_v34 = vpop.f32.mrf.mxu1 }
 0x521   :  { %3395 = vmatprep.subr.mxu0 %v3531_v18  ;;  %3406 = vmatprep.subr.mxu1 %v3531_v18  ;;  %v1814_v45 = vmax.f32 %v1811_v42, 0.0 }
 0x522   :  { %3396 = vmatpush3.msra.mxu0 %v2575_v31  ;;  %3407 = vmatpush3.msra.mxu1 %v2582_v32 }
 0x523   :  { %3397 = vmatprep.subr.mxu0 %v3531_v18  ;;  %3408 = vmatprep.subr.mxu1 %v3531_v18 }
 0x524   :  { %3398 = vmatpush3.msra.mxu0 %v2574_v36  ;;  %3409 = vmatpush3.msra.mxu1 %v2581_v37 }
 0x525   :  { %3415 = vmatprep.subr.mxu0 %v3531_v18  ;;  %3400 = vmatmul.mubr.msk.f32.vlgmr.msra.gmra.mxu0 %vm1434_vm7, %v1813_v35 }
 0x526   :  { %3416 = vmatpush3.msra.mxu0 %v2590_v38  ;;  %3410 = vmatprep.subr.mxu1 %v3531_v18 }
 0x527   :  { %3417 = vmatprep.subr.mxu0 %v3531_v18  ;;  %3411 = vmatpush3.msra.mxu1 %v2580_v39 }
 0x528   :  { %3418 = vmatpush3.msra.mxu0 %v2589_v41  ;;  %3412 = vmatprep.mubr.msk.f32.mxu1 %vm3532_vm2, %v3531_v18 }
 0x529   :  { %3419 = vmatprep.subr.mxu0 %v3531_v18  ;;  %3413 = vmatmul.mubr.msk.f32.vlgmr.msra.gmra.mxu1 %vm1434_vm7, %v2067_v40 }
 0x52a   :  { %3420 = vmatpush3.msra.mxu0 %v2588_v43  ;;  %3425 = vmatprep.mubr.msk.f32.mxu0 %vm3532_vm2, %v3531_v18 }
 0x52b   :  { %3421 = vmatprep.subr.mxu0 %v3531_v18  ;;  %3428 = vmatprep.subr.mxu1 %v3531_v18 }
 0x52c   :  { %3422 = vmatpush3.msra.mxu0 %v2587_v44  ;;  %3442 = vmatprep.mubr.msk.f32.mxu1 %vm3532_vm2, %v3531_v18 }
 0x52d   :  { %3423 = vmatprep.subr.mxu0 %v3531_v18  ;;  %3429 = vmatpush3.msk.msra.mxu1 %vm126_vm0, %v2233_v47 }
 0x52e   :  { %3424 = vmatpush3.msra.mxu0 %v2586_v46  ;;  %3430 = vmatprep.subr.mxu1 %v3531_v18 }
 0x52f   :  { %3426 = vmatmul.mubr.msk.f32.vlgmr.msra.gmra.mxu0 %vm1434_vm7, %v1814_v45  ;;  %3445 = vmatprep.subr.mxu0 %v3531_v18 }
 0x530   :  { %3459 = vmatprep.mubr.msk.f32.mxu0 %vm3532_vm2, %v3531_v18  ;;  %3446 = vmatpush3.msk.msra.mxu0 %vm126_vm0, %v2324_v49 }
 0x531   :  { %3431 = vmatpush3.msra.mxu1 %v2232_v48  ;;  %3447 = vmatprep.subr.mxu0 %v3531_v18 }
 0x532   :  { %3432 = vmatprep.subr.mxu1 %v3531_v18  ;;  %3448 = vmatpush3.msra.mxu0 %v2323_v51 }
 0x533   :  { %3433 = vmatpush3.msra.mxu1 %v2231_v50  ;;  %3449 = vmatprep.subr.mxu0 %v3531_v18 }
 0x534   :  { %3434 = vmatprep.subr.mxu1 %v3531_v18  ;;  %3450 = vmatpush3.msra.mxu0 %v2322_v53 }
 0x535   :  { %3435 = vmatpush3.msra.mxu1 %v2230_v52  ;;  %3451 = vmatprep.subr.mxu0 %v3531_v18 }
 0x536   :  { %3436 = vmatprep.subr.mxu1 %v3531_v18  ;;  %3452 = vmatpush3.msra.mxu0 %v2321_v55 }
 0x537   :  { %3437 = vmatpush3.msra.mxu1 %v2229_v54  ;;  %3453 = vmatprep.subr.mxu0 %v3531_v18 }
 0x538   :  { %3438 = vmatprep.subr.mxu1 %v3531_v18  ;;  %3454 = vmatpush3.msra.mxu0 %v2320_v57 }
 0x539   :  { %3439 = vmatpush3.msra.mxu1 %v2228_v56  ;;  %3455 = vmatprep.subr.mxu0 %v3531_v18 }
 0x53a   :  { %3440 = vmatprep.subr.mxu1 %v3531_v18  ;;  %3456 = vmatpush3.msra.mxu0 %v2319_v59 }
 0x53b   :  { %3441 = vmatpush3.msra.mxu1 %v2227_v58  ;;  %3457 = vmatprep.subr.mxu0 %v3531_v18 }
 0x53c   :  { %3458 = vmatpush3.msra.mxu0 %v2318_v60 }
 0x5db   :  { %v1890_v61 = vpop.f32.mrf.mxu0 }
 0x5dc   :  { %v1900_v2 = vadd.f32 %v2567_v1, %v1890_v61 }
 0x5dd   :  { %v3375_v62 = vpop.f32.mrf.mxu0  ;;  %v1976_v63 = vpop.f32.mrf.mxu1 }
 0x5de   :  { %v1980_v5 = vadd.f32 %v1976_v63, %v1900_v2 }
 0x5df   :  { %v3388_v0 = vpop.f32.mrf.mxu1 }
 0x5e5   :  { %v2056_v3 = vpop.f32.mrf.mxu0 }
 0x5e6   :  { %v2060_v7 = vadd.f32 %v2056_v3, %v1980_v5 }
 0x5e7   :  { %v3401_v4 = vpop.f32.mrf.mxu0 }
 0x5e9   :  { %v2136_v6 = vpop.f32.mrf.mxu1 }
 0x5ea   :  { %v2140_v9 = vadd.f32 %v2136_v6, %v2060_v7 }
 0x5eb   :  { %v3414_v8 = vpop.f32.mrf.mxu1 }
 0x5ef   :  { %v2216_v10 = vpop.f32.mrf.mxu0 }
 0x5f0   :  { %v2220_v11 = vadd.f32 %v2216_v10, %v2140_v9 }
 0x5f1   :  { %v3427_v18 = vpop.f32.mrf.mxu0 }
 0x5f2   :  { %v2221_v12 = vmax.f32 %v2220_v11, 0.0 }
 0x5f4   :  { %v2325_v13 = vrot.slane %v2221_v12, 2  ;;  %3443 = vmatmul.mubr.msk.f32.vlgmr.msra.gmra.mxu1 %vm2234_vm9, %v2221_v12  ;;  %2225 = vst.msk [vmem:[#allocation4 - $0x2] sm:$0xc] %vm2224_vm10, %v2221_v12 }
 0x5f5   :  { %2223 = vst.msk [vmem:[#allocation2] sm:$0x3] %vm2222_vm11, %v2221_v12 }
 0x5f6   :  { %3460 = vmatmul.mubr.msk.f32.vlgmr.msra.gmra.mxu0 %vm2234_vm9, %v2325_v13 }
 0x5f7   :  { %3478 = shalt.err (!%p3475_p4)
}
 0x5f8   :  { %2423 = dma.vmem_to_hbm [thread:$0]  %s2421_s15, 32, %s4631_s19, [#allocation5]  }
 0x5f9   :  { %s3487_s30 = scalar_lea.vmem %s2411_s7, 32  ;;  %p3492_p6 = scmp.lt.s32.totalorder %s2411_s7, %s2411_s7 }
 0x5fa   :  { %p3488_p5 = scmp.ne.s32.totalorder %s2411_s7, %s3487_s30  ;;  %p3493_p7 = scmp.lt.s32.totalorder %s3487_s30, %s3487_s30 }
 0x5fc   :  { %p3494_p8 = por %p3493_p7, %p3492_p6 }
 0x5fe   :  { %p3495_p9 = pnand %p3494_p8, %p3488_p5 }
 0x600   :  { %3498 = shalt.err (!%p3495_p9)
}
 0x601   :  { %2413 = dma.vmem_to_hbm [thread:$0]  %s2411_s7, 32, %s4630_s18, [#allocation3]   ;;  %v2594_v14 = vld [vmem:[%s4629_s17] ss:$0 sm:$0xff]  ;;  %vm2402_vm12 = vcmask 74752  }
 0x602   :  { %s3535_s5 = smov [#allocation6]  }
 0x603   :  { %s2430_s22 = sshll.u32 %s3535_s5, 4  ;;  %s2431_s22 = int_to_ptr.vmem [resolvable:$true] %s2430_s22 }
 0x604   :  { %s3507_s19 = scalar_lea.vmem %s2431_s22, 32  ;;  %p3512_p11 = scmp.lt.s32.totalorder %s2431_s22, %s2431_s22 }
 0x605   :  { %p3508_p10 = scmp.ne.s32.totalorder %s2431_s22, %s3507_s19  ;;  %p3513_p12 = scmp.lt.s32.totalorder %s3507_s19, %s3507_s19 }
 0x607   :  { %p3514_p13 = por %p3513_p12, %p3512_p11 }
 0x609   :  { %p3515_p0 = pnand %p3514_p13, %p3508_p10 }
 0x6b4   :  { %v2307_v15 = vpop.f32.mrf.mxu1 }
 0x6b5   :  { %v2317_v16 = vadd.f32 %v2594_v14, %v2307_v15 }
 0x6b6   :  { %v3444_v17 = vpop.f32.mrf.mxu1  ;;  %v2397_v19 = vpop.f32.mrf.mxu0 }
 0x6b7   :  { %v2401_v20 = vadd.f32 %v2397_v19, %v2317_v16 }
 0x6b8   :  { %v3461_v21 = vpop.f32.mrf.mxu0 }
 0x6b9   :  { %2403 = vst.msk [vmem:[#allocation6] sm:$0x3] %vm2402_vm12, %v2401_v20 }
 0x6ba   :  { %3518 = shalt.err (!%p3515_p0)
}
 0x6bb   :  { %2433 = dma.vmem_to_hbm [thread:$0]  %s2431_s22, 32, %s4632_s20, [#allocation5]  }
 0x6bc   :  { %3527 = dma.done.wait [#allocation3], 32  }
 0x6bd   :  { %3528 = vsyncadd [#allocation3], 4294967264 }
 0x6be   :  { %3529 = dma.done.wait [#allocation5], 64  }
 0x6bf   :  { %3530 = vsyncadd [#allocation5], 4294967232 }
 0x6c0   :  { %2443 = vsyncpa [#allocation3], 1 }
 0x6c1   :  { %2444 = vsyncpa [#allocation5], 1 }

</bundles_post_ra>
